<compile_context>
chip_gen: v7x
topology: tpu7x:2x2x1
jax: 0.10.0
libtpu: 0.0.40
codegen_flags: <defaults>
</compile_context>

<pallas_src>
import jax
import jax.numpy as jnp
import numpy as np
from jax.experimental import pallas as pl
from jax.experimental.pallas import tpu as pltpu

BN_EPS = 1e-5
VMEM_LIMIT = 48 * 1024 * 1024   # above 16/32 MiB scoped defaults, below every gen's physical


# --------------------------- shared banded-conv core ---------------------------
def _zero_halo_faces(xpad_ref):
    # Only the D/H halo faces need zeroing (W padding is folded into the banded weights);
    # the interior is fully overwritten every grid step, so no full-scratch memset.
    Dp, Hp, L = xpad_ref.shape
    zd = jnp.zeros((1, Hp, L), jnp.float32)
    xpad_ref[0:1, :, :] = zd
    xpad_ref[Dp - 1:Dp, :, :] = zd
    zh = jnp.zeros((Dp, 1, L), jnp.float32)
    xpad_ref[:, 0:1, :] = zh
    xpad_ref[:, Hp - 1:Hp, :] = zh


def _banded_conv_core(xpad_ref, wband_ref, b_ref, y_ref, sum_ref, sq_ref):
    """xpad_ref : (D+2, H+2, W*Cin)  VMEM scratch; halo faces zero, interior = input.
       wband_ref: (9, W*Cin, W*Cout) block-banded weights (kw taps + W zero-pad folded in).
       b_ref    : (1, W*Cout)        bias tiled over W.
       y_ref    : (1, D*H, W*Cout)   lane-dense output block.
       sum_ref/sq_ref: (1, 1, W*Cout) per-sample BN partial sums (training-mode BN)."""
    Dp, Hp, _ = xpad_ref.shape
    D, H = Dp - 2, Hp - 2

    acc = None
    for t in range(9):                              # one matmul per (kd, kh) tap
        kd, kh = divmod(t, 3)
        # Sublane-only slice, lane dim untouched -> no relayout; reshape merges leading dims.
        slab = xpad_ref[kd:kd + D, kh:kh + H, :].reshape(D * H, -1)
        part = jnp.dot(slab, wband_ref[t], preferred_element_type=jnp.float32)
        acc = part if acc is None else acc + part
    acc = acc + b_ref[...]                          # (D*H, W*Cout)

    y_ref[0] = acc                                  # lane-dense store, no reshape/relayout
    sum_ref[0] = jnp.sum(acc, axis=0, keepdims=True)
    sq_ref[0] = jnp.sum(acc * acc, axis=0, keepdims=True)


# ------------------- pass A: maxpool(2) + conv1 + BN partials -------------------
def _pool_conv_kernel(x_ref, wband_ref, b_ref, y_ref, sum_ref, sq_ref, xpad_ref):
    # x_ref: (1, 8, D, H, W*Cin) -- the 2x2x2 pool window was exposed as axis 1 by the
    # wrapper's (mandatory) layout transpose; (W, Cin) are fused on the lane axis.
    _, _, D, H, _ = x_ref.shape

    p = x_ref[0, 0]
    for i in range(1, 8):
        p = jnp.maximum(p, x_ref[0, i])             # (D, H, W*Cin), full-lane-width maxes

    _zero_halo_faces(xpad_ref)
    xpad_ref[1:1 + D, 1:1 + H, :] = p

    _banded_conv_core(xpad_ref, wband_ref, b_ref, y_ref, sum_ref, sq_ref)


def pool_conv_stats(xr, wband, bias, D, H, W, Cout):
    N = xr.shape[0]
    Lin = xr.shape[-1]
    Lout = W * Cout
    return pl.pallas_call(
        _pool_conv_kernel,
        out_shape=(
            jax.ShapeDtypeStruct((N, D * H, Lout), jnp.float32),
            jax.ShapeDtypeStruct((N, 1, Lout), jnp.float32),
            jax.ShapeDtypeStruct((N, 1, Lout), jnp.float32),
        ),
        grid=(N,),
        in_specs=[
            pl.BlockSpec((1, 8, D, H, Lin), lambda n: (n, 0, 0, 0, 0)),
            pl.BlockSpec((9, Lin, Lout), lambda n: (0, 0, 0)),   # resident weights
            pl.BlockSpec((1, Lout), lambda n: (0, 0)),
        ],
        out_specs=(
            pl.BlockSpec((1, D * H, Lout), lambda n: (n, 0, 0)),
            pl.BlockSpec((1, 1, Lout), lambda n: (n, 0, 0)),
            pl.BlockSpec((1, 1, Lout), lambda n: (n, 0, 0)),
        ),
        scratch_shapes=[pltpu.VMEM((D + 2, H + 2, Lin), jnp.float32)],
        compiler_params=pltpu.CompilerParams(
            dimension_semantics=("parallel",), vmem_limit_bytes=VMEM_LIMIT),
    )(xr, wband, bias)


# ---------------- pass B: BN1-apply + ReLU (on load) + conv2 + BN partials ----------------
def _bnrelu_conv_kernel(y1_ref, s_ref, t_ref, wband_ref, b_ref,
                        y_ref, sum_ref, sq_ref, xpad_ref):
    Dp, Hp, _ = xpad_ref.shape
    D, H = Dp - 2, Hp - 2

    # BN1 + ReLU fused into conv2's input read; lane layout identical to pass A's output.
    a = jnp.maximum(y1_ref[0] * s_ref[...] + t_ref[...], 0.0)    # (D*H, W*C1)

    _zero_halo_faces(xpad_ref)
    xpad_ref[1:1 + D, 1:1 + H, :] = a.reshape(D, H, -1)          # split leading dim only

    _banded_conv_core(xpad_ref, wband_ref, b_ref, y_ref, sum_ref, sq_ref)


def bnrelu_conv_stats(y1, scale_l, shift_l, wband, bias, D, H, W, Cout):
    N = y1.shape[0]
    Lin = y1.shape[-1]
    Lout = W * Cout
    return pl.pallas_call(
        _bnrelu_conv_kernel,
        out_shape=(
            jax.ShapeDtypeStruct((N, D * H, Lout), jnp.float32),
            jax.ShapeDtypeStruct((N, 1, Lout), jnp.float32),
            jax.ShapeDtypeStruct((N, 1, Lout), jnp.float32),
        ),
        grid=(N,),
        in_specs=[
            pl.BlockSpec((1, D * H, Lin), lambda n: (n, 0, 0)),
            pl.BlockSpec((1, Lin), lambda n: (0, 0)),
            pl.BlockSpec((1, Lin), lambda n: (0, 0)),
            pl.BlockSpec((9, Lin, Lout), lambda n: (0, 0, 0)),
            pl.BlockSpec((1, Lout), lambda n: (0, 0)),
        ],
        out_specs=(
            pl.BlockSpec((1, D * H, Lout), lambda n: (n, 0, 0)),
            pl.BlockSpec((1, 1, Lout), lambda n: (n, 0, 0)),
            pl.BlockSpec((1, 1, Lout), lambda n: (n, 0, 0)),
        ),
        scratch_shapes=[pltpu.VMEM((D + 2, H + 2, Lin), jnp.float32)],
        compiler_params=pltpu.CompilerParams(
            dimension_semantics=("parallel",), vmem_limit_bytes=VMEM_LIMIT),
    )(y1, scale_l, shift_l, wband, bias)


# ------------------------------- XLA-side glue -------------------------------
def _band_weights(w_dhwio, W):
    """(3,3,3,Cin,Cout) DHWIO weights -> (9, W*Cin, W*Cout) per-(kd,kh) block-banded
    matrices that realize both the kw taps and the W-direction zero padding, so the kernel
    contracts a full (W*Cin)-wide lane axis with no im2col and no lane shifts."""
    shifts = jnp.stack([jnp.eye(W, W, k=1 - kw, dtype=w_dhwio.dtype) for kw in range(3)])
    band = jnp.einsum("kab,dhkio->dhaibo", shifts, w_dhwio)       # (3,3,W,Cin,W,Cout)
    Cin, Cout = w_dhwio.shape[3], w_dhwio.shape[4]
    return band.reshape(9, W * Cin, W * Cout)


def _bn_affine(psum, psq, gamma, beta, count, W):
    # Training-mode BN affine from per-sample partial sums (biased variance).
    # TODO(synk): E[x^2]-E[x]^2 cancels badly at scale; use centered per-sample partials then.
    C = gamma.shape[0]
    s = psum.reshape(-1, W, C).sum(axis=(0, 1))
    q = psq.reshape(-1, W, C).sum(axis=(0, 1))
    mean = s / count
    var = q / count - mean * mean
    scale = gamma / jnp.sqrt(var + BN_EPS)
    shift = beta - mean * scale
    return scale, shift


# -------------------------------- Down3d forward --------------------------------
def down3d_forward(x_ncdhw, params):
    N, Cin, D, H, W = x_ncdhw.shape
    # TODO(synk): PyTorch MaxPool3d(2) floors odd spatial dims; this path assumes even D/H/W.
    D2, H2, W2 = D // 2, H // 2, W // 2
    Cmid = params["w1"].shape[-1]
    Cout = params["w2"].shape[-1]

    # One XLA transpose: NCDHW -> (N, pool-window, D2, H2, W2*Cin). It both exposes the
    # 2x2x2 pool window on a single axis and fuses (W2, Cin) onto the lane axis.
    xr = (x_ncdhw.reshape(N, Cin, D2, 2, H2, 2, W2, 2)
          .transpose(0, 3, 5, 7, 2, 4, 6, 1)
          .reshape(N, 8, D2, H2, W2 * Cin))

    wb1 = _band_weights(params["w1"], W2)                         # (9, W2*Cin,  W2*Cmid)
    wb2 = _band_weights(params["w2"], W2)                         # (9, W2*Cmid, W2*Cout)
    b1 = jnp.tile(params["b1"].reshape(-1), W2).reshape(1, W2 * Cmid)
    b2 = jnp.tile(params["b2"].reshape(-1), W2).reshape(1, W2 * Cout)
    count = N * D2 * H2 * W2

    y1, s1, q1 = pool_conv_stats(xr, wb1, b1, D2, H2, W2, Cmid)
    sc1, sh1 = _bn_affine(s1, q1, params["g1"], params["be1"], count, W2)

    y2, s2, q2 = bnrelu_conv_stats(
        y1, jnp.tile(sc1, W2).reshape(1, -1), jnp.tile(sh1, W2).reshape(1, -1),
        wb2, b2, D2, H2, W2, Cout)
    sc2, sh2 = _bn_affine(s2, q2, params["g2"], params["be2"], count, W2)

    # Final BN2-apply + ReLU folded into the (mandatory) NDHWC->NCDHW transpose in XLA.
    y2r = y2.reshape(N, D2, H2, W2, Cout)
    out = jnp.maximum(y2r * sc2 + sh2, 0.0)
    return jnp.transpose(out, (0, 4, 1, 2, 3))


# --------------------------- deterministic parameter init ---------------------------
def init_params(key, cin, cmid, cout):
    def conv_init(kk, ci, co):
        fan_in = ci * 27
        bound = 1.0 / np.sqrt(fan_in)
        kw_, kb = jax.random.split(kk)
        w = jax.random.uniform(kw_, (co, ci, 3, 3, 3), jnp.float32, -bound, bound)
        b = jax.random.uniform(kb, (co,), jnp.float32, -bound, bound)
        # PyTorch (Cout, Cin, kd, kh, kw) -> (kd, kh, kw, Cin, Cout)
        return jnp.transpose(w, (2, 3, 4, 1, 0)), b.reshape(1, co)

    k1, k2 = jax.random.split(key)
    w1, b1 = conv_init(k1, cin, cmid)
    w2, b2 = conv_init(k2, cmid, cout)
    return dict(
        w1=w1, b1=b1, g1=jnp.ones((cmid,), jnp.float32), be1=jnp.zeros((cmid,), jnp.float32),
        w2=w2, b2=b2, g2=jnp.ones((cout,), jnp.float32), be2=jnp.zeros((cout,), jnp.float32),
    )


# ------------------------------- pure-JAX reference -------------------------------
def reference_forward(x_ncdhw, params):
    x = jnp.transpose(x_ncdhw, (0, 2, 3, 4, 1))
    N, D, H, W, C = x.shape
    x = x.reshape(N, D // 2, 2, H // 2, 2, W // 2, 2, C).max(axis=(2, 4, 6))

    def block(x, w, b, g, be):
        y = jax.lax.conv_general_dilated(
            x, w, window_strides=(1, 1, 1), padding="SAME",
            dimension_numbers=("NDHWC", "DHWIO", "NDHWC")) + b
        cnt = y.shape[0] * y.shape[1] * y.shape[2] * y.shape[3]
        mean = y.sum(axis=(0, 1, 2, 3)) / cnt
        msq = (y * y).sum(axis=(0, 1, 2, 3)) / cnt
        var = msq - mean * mean
        scale = g / jnp.sqrt(var + BN_EPS)
        shift = be - mean * scale
        return jnp.maximum(y * scale + shift, 0.0)

    x = block(x, params["w1"], params["b1"], params["g1"], params["be1"])
    x = block(x, params["w2"], params["b2"], params["g2"], params["be2"])
    return jnp.transpose(x, (0, 4, 1, 2, 3))


if __name__ == "__main__":
    key = jax.random.PRNGKey(0)
    kx, kp = jax.random.split(key)
    N, Cin, Cmid, Cout, S = 2, 4, 8, 8, 16

    x = jax.random.normal(kx, (N, Cin, S, S, S), jnp.float32)   # NCDHW, like PyTorch
    params = init_params(kp, Cin, Cmid, Cout)

    out = jax.jit(down3d_forward)(x, params)
    out = jax.block_until_ready(out)

    assert out.shape == (N, Cout, S // 2, S // 2, S // 2), out.shape
    assert np.isfinite(np.asarray(out)).all()

    ref = reference_forward(x, params)
    err = float(jnp.max(jnp.abs(out - ref)))
    if err > 5e-3:
        raise AssertionError(f"mismatch vs reference, max abs err = {err}")

    print("KERNEL_OK")
</pallas_src>

<mosaic_0001>
module attributes {stable_mosaic.version = 11 : i64} {
  func.func @_pool_conv_kernel(%arg0: i32, %arg1: memref<1x8x8x8x32xf32, #tpu.memory_space<vmem>>, %arg2: memref<9x32x64xf32, #tpu.memory_space<vmem>>, %arg3: memref<1x64xf32, #tpu.memory_space<vmem>>, %arg4: memref<1x64x64xf32, #tpu.memory_space<vmem>>, %arg5: memref<1x1x64xf32, #tpu.memory_space<vmem>>, %arg6: memref<1x1x64xf32, #tpu.memory_space<vmem>>, %arg7: memref<10x10x32xf32, #tpu.memory_space<vmem>>) attributes {dimension_semantics = [#tpu.dimension_semantics<parallel>], iteration_bounds = array<i64: 2>, scalar_prefetch = 0 : i64, scratch_operands = 1 : i64, tpu.core_type = #tpu.core_type<tc>, window_params = [{transform_indices = @transform_0, window_bounds = array<i64: 1, 8, 8, 8, 32>}, {pipeline_mode = #tpu.pipeline_mode<synchronous>, transform_indices = @transform_1, window_bounds = array<i64: 9, 32, 64>}, {pipeline_mode = #tpu.pipeline_mode<synchronous>, transform_indices = @transform_2, window_bounds = array<i64: 1, 64>}, {transform_indices = @transform_3, window_bounds = array<i64: 1, 64, 64>}, {transform_indices = @transform_4, window_bounds = array<i64: 1, 1, 64>}, {transform_indices = @transform_5, window_bounds = array<i64: 1, 1, 64>}]} {
    %c0 = arith.constant 0 : index
    %c0_0 = arith.constant 0 : index
    %c0_1 = arith.constant 0 : index
    %c0_2 = arith.constant 0 : index
    %c0_3 = arith.constant 0 : index
    %0 = vector.load %arg1[%c0, %c0_0, %c0_1, %c0_2, %c0_3] : memref<1x8x8x8x32xf32, #tpu.memory_space<vmem>>, vector<1x1x8x8x32xf32>
    %1 = vector.shape_cast %0 : vector<1x1x8x8x32xf32> to vector<8x8x32xf32>
    %c0_4 = arith.constant 0 : index
    %c1 = arith.constant 1 : index
    %c0_5 = arith.constant 0 : index
    %c0_6 = arith.constant 0 : index
    %c0_7 = arith.constant 0 : index
    %2 = vector.load %arg1[%c0_4, %c1, %c0_5, %c0_6, %c0_7] : memref<1x8x8x8x32xf32, #tpu.memory_space<vmem>>, vector<1x1x8x8x32xf32>
    %3 = vector.shape_cast %2 : vector<1x1x8x8x32xf32> to vector<8x8x32xf32>
    %4 = arith.maximumf %1, %3 : vector<8x8x32xf32>
    %c0_8 = arith.constant 0 : index
    %c2 = arith.constant 2 : index
    %c0_9 = arith.constant 0 : index
    %c0_10 = arith.constant 0 : index
    %c0_11 = arith.constant 0 : index
    %5 = vector.load %arg1[%c0_8, %c2, %c0_9, %c0_10, %c0_11] : memref<1x8x8x8x32xf32, #tpu.memory_space<vmem>>, vector<1x1x8x8x32xf32>
    %6 = vector.shape_cast %5 : vector<1x1x8x8x32xf32> to vector<8x8x32xf32>
    %7 = arith.maximumf %4, %6 : vector<8x8x32xf32>
    %c0_12 = arith.constant 0 : index
    %c3 = arith.constant 3 : index
    %c0_13 = arith.constant 0 : index
    %c0_14 = arith.constant 0 : index
    %c0_15 = arith.constant 0 : index
    %8 = vector.load %arg1[%c0_12, %c3, %c0_13, %c0_14, %c0_15] : memref<1x8x8x8x32xf32, #tpu.memory_space<vmem>>, vector<1x1x8x8x32xf32>
    %9 = vector.shape_cast %8 : vector<1x1x8x8x32xf32> to vector<8x8x32xf32>
    %10 = arith.maximumf %7, %9 : vector<8x8x32xf32>
    %c0_16 = arith.constant 0 : index
    %c4 = arith.constant 4 : index
    %c0_17 = arith.constant 0 : index
    %c0_18 = arith.constant 0 : index
    %c0_19 = arith.constant 0 : index
    %11 = vector.load %arg1[%c0_16, %c4, %c0_17, %c0_18, %c0_19] : memref<1x8x8x8x32xf32, #tpu.memory_space<vmem>>, vector<1x1x8x8x32xf32>
    %12 = vector.shape_cast %11 : vector<1x1x8x8x32xf32> to vector<8x8x32xf32>
    %13 = arith.maximumf %10, %12 : vector<8x8x32xf32>
    %c0_20 = arith.constant 0 : index
    %c5 = arith.constant 5 : index
    %c0_21 = arith.constant 0 : index
    %c0_22 = arith.constant 0 : index
    %c0_23 = arith.constant 0 : index
    %14 = vector.load %arg1[%c0_20, %c5, %c0_21, %c0_22, %c0_23] : memref<1x8x8x8x32xf32, #tpu.memory_space<vmem>>, vector<1x1x8x8x32xf32>
    %15 = vector.shape_cast %14 : vector<1x1x8x8x32xf32> to vector<8x8x32xf32>
    %16 = arith.maximumf %13, %15 : vector<8x8x32xf32>
    %c0_24 = arith.constant 0 : index
    %c6 = arith.constant 6 : index
    %c0_25 = arith.constant 0 : index
    %c0_26 = arith.constant 0 : index
    %c0_27 = arith.constant 0 : index
    %17 = vector.load %arg1[%c0_24, %c6, %c0_25, %c0_26, %c0_27] : memref<1x8x8x8x32xf32, #tpu.memory_space<vmem>>, vector<1x1x8x8x32xf32>
    %18 = vector.shape_cast %17 : vector<1x1x8x8x32xf32> to vector<8x8x32xf32>
    %19 = arith.maximumf %16, %18 : vector<8x8x32xf32>
    %c0_28 = arith.constant 0 : index
    %c7 = arith.constant 7 : index
    %c0_29 = arith.constant 0 : index
    %c0_30 = arith.constant 0 : index
    %c0_31 = arith.constant 0 : index
    %20 = vector.load %arg1[%c0_28, %c7, %c0_29, %c0_30, %c0_31] : memref<1x8x8x8x32xf32, #tpu.memory_space<vmem>>, vector<1x1x8x8x32xf32>
    %21 = vector.shape_cast %20 : vector<1x1x8x8x32xf32> to vector<8x8x32xf32>
    %22 = arith.maximumf %19, %21 : vector<8x8x32xf32>
    %cst = arith.constant 0.000000e+00 : f32
    %23 = vector.broadcast %cst : f32 to vector<1x10x32xf32>
    %c0_32 = arith.constant 0 : index
    %c0_33 = arith.constant 0 : index
    %c0_34 = arith.constant 0 : index
    %24 = vector.load %arg7[%c0_32, %c0_33, %c0_34] : memref<10x10x32xf32, #tpu.memory_space<vmem>>, vector<1x10x32xf32>
    tpu.vector_store %arg7[%c0_32, %c0_33, %c0_34], %23 {strides = array<i32>} : memref<10x10x32xf32, #tpu.memory_space<vmem>>, vector<1x10x32xf32>,
    %c9 = arith.constant 9 : index
    %c0_35 = arith.constant 0 : index
    %c0_36 = arith.constant 0 : index
    %25 = vector.load %arg7[%c9, %c0_35, %c0_36] : memref<10x10x32xf32, #tpu.memory_space<vmem>>, vector<1x10x32xf32>
    tpu.vector_store %arg7[%c9, %c0_35, %c0_36], %23 {strides = array<i32>} : memref<10x10x32xf32, #tpu.memory_space<vmem>>, vector<1x10x32xf32>,
    %cst_37 = arith.constant 0.000000e+00 : f32
    %26 = vector.broadcast %cst_37 : f32 to vector<10x1x32xf32>
    %c0_38 = arith.constant 0 : index
    %c0_39 = arith.constant 0 : index
    %c0_40 = arith.constant 0 : index
    %27 = vector.load %arg7[%c0_38, %c0_39, %c0_40] : memref<10x10x32xf32, #tpu.memory_space<vmem>>, vector<10x1x32xf32>
    tpu.vector_store %arg7[%c0_38, %c0_39, %c0_40], %26 {strides = array<i32>} : memref<10x10x32xf32, #tpu.memory_space<vmem>>, vector<10x1x32xf32>,
    %c0_41 = arith.constant 0 : index
    %c9_42 = arith.constant 9 : index
    %c0_43 = arith.constant 0 : index
    %28 = vector.load %arg7[%c0_41, %c9_42, %c0_43] : memref<10x10x32xf32, #tpu.memory_space<vmem>>, vector<10x1x32xf32>
    tpu.vector_store %arg7[%c0_41, %c9_42, %c0_43], %26 {strides = array<i32>} : memref<10x10x32xf32, #tpu.memory_space<vmem>>, vector<10x1x32xf32>,
    %c1_44 = arith.constant 1 : index
    %c1_45 = arith.constant 1 : index
    %c0_46 = arith.constant 0 : index
    %29 = vector.load %arg7[%c1_44, %c1_45, %c0_46] : memref<10x10x32xf32, #tpu.memory_space<vmem>>, vector<8x8x32xf32>
    tpu.vector_store %arg7[%c1_44, %c1_45, %c0_46], %22 {strides = array<i32>} : memref<10x10x32xf32, #tpu.memory_space<vmem>>, vector<8x8x32xf32>,
    %c0_47 = arith.constant 0 : index
    %c0_48 = arith.constant 0 : index
    %c0_49 = arith.constant 0 : index
    %30 = vector.load %arg7[%c0_47, %c0_48, %c0_49] : memref<10x10x32xf32, #tpu.memory_space<vmem>>, vector<8x8x32xf32>
    %31 = vector.shape_cast %30 : vector<8x8x32xf32> to vector<64x32xf32>
    %c0_50 = arith.constant 0 : index
    %c0_51 = arith.constant 0 : index
    %c0_52 = arith.constant 0 : index
    %32 = vector.load %arg2[%c0_50, %c0_51, %c0_52] : memref<9x32x64xf32, #tpu.memory_space<vmem>>, vector<1x32x64xf32>
    %33 = vector.shape_cast %32 : vector<1x32x64xf32> to vector<32x64xf32>
    %cst_53 = arith.constant dense<0.000000e+00> : vector<64x64xf32>
    %34 = tpu.matmul %31, %33, %cst_53 {dimension_numbers = #tpu.dot_dimension_numbers<[1], [0], [0], [1], [0, 0, 1, 1], [], []>} : vector<64x32xf32>, vector<32x64xf32>, vector<64x64xf32> -> vector<64x64xf32>
    %c0_54 = arith.constant 0 : index
    %c1_55 = arith.constant 1 : index
    %c0_56 = arith.constant 0 : index
    %35 = vector.load %arg7[%c0_54, %c1_55, %c0_56] : memref<10x10x32xf32, #tpu.memory_space<vmem>>, vector<8x8x32xf32>
    %36 = vector.shape_cast %35 : vector<8x8x32xf32> to vector<64x32xf32>
    %c1_57 = arith.constant 1 : index
    %c0_58 = arith.constant 0 : index
    %c0_59 = arith.constant 0 : index
    %37 = vector.load %arg2[%c1_57, %c0_58, %c0_59] : memref<9x32x64xf32, #tpu.memory_space<vmem>>, vector<1x32x64xf32>
    %38 = vector.shape_cast %37 : vector<1x32x64xf32> to vector<32x64xf32>
    %cst_60 = arith.constant dense<0.000000e+00> : vector<64x64xf32>
    %39 = tpu.matmul %36, %38, %cst_60 {dimension_numbers = #tpu.dot_dimension_numbers<[1], [0], [0], [1], [0, 0, 1, 1], [], []>} : vector<64x32xf32>, vector<32x64xf32>, vector<64x64xf32> -> vector<64x64xf32>
    %40 = arith.addf %34, %39 : vector<64x64xf32>
    %c0_61 = arith.constant 0 : index
    %c2_62 = arith.constant 2 : index
    %c0_63 = arith.constant 0 : index
    %41 = vector.load %arg7[%c0_61, %c2_62, %c0_63] : memref<10x10x32xf32, #tpu.memory_space<vmem>>, vector<8x8x32xf32>
    %42 = vector.shape_cast %41 : vector<8x8x32xf32> to vector<64x32xf32>
    %c2_64 = arith.constant 2 : index
    %c0_65 = arith.constant 0 : index
    %c0_66 = arith.constant 0 : index
    %43 = vector.load %arg2[%c2_64, %c0_65, %c0_66] : memref<9x32x64xf32, #tpu.memory_space<vmem>>, vector<1x32x64xf32>
    %44 = vector.shape_cast %43 : vector<1x32x64xf32> to vector<32x64xf32>
    %cst_67 = arith.constant dense<0.000000e+00> : vector<64x64xf32>
    %45 = tpu.matmul %42, %44, %cst_67 {dimension_numbers = #tpu.dot_dimension_numbers<[1], [0], [0], [1], [0, 0, 1, 1], [], []>} : vector<64x32xf32>, vector<32x64xf32>, vector<64x64xf32> -> vector<64x64xf32>
    %46 = arith.addf %40, %45 : vector<64x64xf32>
    %c1_68 = arith.constant 1 : index
    %c0_69 = arith.constant 0 : index
    %c0_70 = arith.constant 0 : index
    %47 = vector.load %arg7[%c1_68, %c0_69, %c0_70] : memref<10x10x32xf32, #tpu.memory_space<vmem>>, vector<8x8x32xf32>
    %48 = vector.shape_cast %47 : vector<8x8x32xf32> to vector<64x32xf32>
    %c3_71 = arith.constant 3 : index
    %c0_72 = arith.constant 0 : index
    %c0_73 = arith.constant 0 : index
    %49 = vector.load %arg2[%c3_71, %c0_72, %c0_73] : memref<9x32x64xf32, #tpu.memory_space<vmem>>, vector<1x32x64xf32>
    %50 = vector.shape_cast %49 : vector<1x32x64xf32> to vector<32x64xf32>
    %cst_74 = arith.constant dense<0.000000e+00> : vector<64x64xf32>
    %51 = tpu.matmul %48, %50, %cst_74 {dimension_numbers = #tpu.dot_dimension_numbers<[1], [0], [0], [1], [0, 0, 1, 1], [], []>} : vector<64x32xf32>, vector<32x64xf32>, vector<64x64xf32> -> vector<64x64xf32>
    %52 = arith.addf %46, %51 : vector<64x64xf32>
    %c1_75 = arith.constant 1 : index
    %c1_76 = arith.constant 1 : index
    %c0_77 = arith.constant 0 : index
    %53 = vector.load %arg7[%c1_75, %c1_76, %c0_77] : memref<10x10x32xf32, #tpu.memory_space<vmem>>, vector<8x8x32xf32>
    %54 = vector.shape_cast %53 : vector<8x8x32xf32> to vector<64x32xf32>
    %c4_78 = arith.constant 4 : index
    %c0_79 = arith.constant 0 : index
    %c0_80 = arith.constant 0 : index
    %55 = vector.load %arg2[%c4_78, %c0_79, %c0_80] : memref<9x32x64xf32, #tpu.memory_space<vmem>>, vector<1x32x64xf32>
    %56 = vector.shape_cast %55 : vector<1x32x64xf32> to vector<32x64xf32>
    %cst_81 = arith.constant dense<0.000000e+00> : vector<64x64xf32>
    %57 = tpu.matmul %54, %56, %cst_81 {dimension_numbers = #tpu.dot_dimension_numbers<[1], [0], [0], [1], [0, 0, 1, 1], [], []>} : vector<64x32xf32>, vector<32x64xf32>, vector<64x64xf32> -> vector<64x64xf32>
    %58 = arith.addf %52, %57 : vector<64x64xf32>
    %c1_82 = arith.constant 1 : index
    %c2_83 = arith.constant 2 : index
    %c0_84 = arith.constant 0 : index
    %59 = vector.load %arg7[%c1_82, %c2_83, %c0_84] : memref<10x10x32xf32, #tpu.memory_space<vmem>>, vector<8x8x32xf32>
    %60 = vector.shape_cast %59 : vector<8x8x32xf32> to vector<64x32xf32>
    %c5_85 = arith.constant 5 : index
    %c0_86 = arith.constant 0 : index
    %c0_87 = arith.constant 0 : index
    %61 = vector.load %arg2[%c5_85, %c0_86, %c0_87] : memref<9x32x64xf32, #tpu.memory_space<vmem>>, vector<1x32x64xf32>
    %62 = vector.shape_cast %61 : vector<1x32x64xf32> to vector<32x64xf32>
    %cst_88 = arith.constant dense<0.000000e+00> : vector<64x64xf32>
    %63 = tpu.matmul %60, %62, %cst_88 {dimension_numbers = #tpu.dot_dimension_numbers<[1], [0], [0], [1], [0, 0, 1, 1], [], []>} : vector<64x32xf32>, vector<32x64xf32>, vector<64x64xf32> -> vector<64x64xf32>
    %64 = arith.addf %58, %63 : vector<64x64xf32>
    %c2_89 = arith.constant 2 : index
    %c0_90 = arith.constant 0 : index
    %c0_91 = arith.constant 0 : index
    %65 = vector.load %arg7[%c2_89, %c0_90, %c0_91] : memref<10x10x32xf32, #tpu.memory_space<vmem>>, vector<8x8x32xf32>
    %66 = vector.shape_cast %65 : vector<8x8x32xf32> to vector<64x32xf32>
    %c6_92 = arith.constant 6 : index
    %c0_93 = arith.constant 0 : index
    %c0_94 = arith.constant 0 : index
    %67 = vector.load %arg2[%c6_92, %c0_93, %c0_94] : memref<9x32x64xf32, #tpu.memory_space<vmem>>, vector<1x32x64xf32>
    %68 = vector.shape_cast %67 : vector<1x32x64xf32> to vector<32x64xf32>
    %cst_95 = arith.constant dense<0.000000e+00> : vector<64x64xf32>
    %69 = tpu.matmul %66, %68, %cst_95 {dimension_numbers = #tpu.dot_dimension_numbers<[1], [0], [0], [1], [0, 0, 1, 1], [], []>} : vector<64x32xf32>, vector<32x64xf32>, vector<64x64xf32> -> vector<64x64xf32>
    %70 = arith.addf %64, %69 : vector<64x64xf32>
    %c2_96 = arith.constant 2 : index
    %c1_97 = arith.constant 1 : index
    %c0_98 = arith.constant 0 : index
    %71 = vector.load %arg7[%c2_96, %c1_97, %c0_98] : memref<10x10x32xf32, #tpu.memory_space<vmem>>, vector<8x8x32xf32>
    %72 = vector.shape_cast %71 : vector<8x8x32xf32> to vector<64x32xf32>
    %c7_99 = arith.constant 7 : index
    %c0_100 = arith.constant 0 : index
    %c0_101 = arith.constant 0 : index
    %73 = vector.load %arg2[%c7_99, %c0_100, %c0_101] : memref<9x32x64xf32, #tpu.memory_space<vmem>>, vector<1x32x64xf32>
    %74 = vector.shape_cast %73 : vector<1x32x64xf32> to vector<32x64xf32>
    %cst_102 = arith.constant dense<0.000000e+00> : vector<64x64xf32>
    %75 = tpu.matmul %72, %74, %cst_102 {dimension_numbers = #tpu.dot_dimension_numbers<[1], [0], [0], [1], [0, 0, 1, 1], [], []>} : vector<64x32xf32>, vector<32x64xf32>, vector<64x64xf32> -> vector<64x64xf32>
    %76 = arith.addf %70, %75 : vector<64x64xf32>
    %c2_103 = arith.constant 2 : index
    %c2_104 = arith.constant 2 : index
    %c0_105 = arith.constant 0 : index
    %77 = vector.load %arg7[%c2_103, %c2_104, %c0_105] : memref<10x10x32xf32, #tpu.memory_space<vmem>>, vector<8x8x32xf32>
    %78 = vector.shape_cast %77 : vector<8x8x32xf32> to vector<64x32xf32>
    %c8 = arith.constant 8 : index
    %c0_106 = arith.constant 0 : index
    %c0_107 = arith.constant 0 : index
    %79 = vector.load %arg2[%c8, %c0_106, %c0_107] : memref<9x32x64xf32, #tpu.memory_space<vmem>>, vector<1x32x64xf32>
    %80 = vector.shape_cast %79 : vector<1x32x64xf32> to vector<32x64xf32>
    %cst_108 = arith.constant dense<0.000000e+00> : vector<64x64xf32>
    %81 = tpu.matmul %78, %80, %cst_108 {dimension_numbers = #tpu.dot_dimension_numbers<[1], [0], [0], [1], [0, 0, 1, 1], [], []>} : vector<64x32xf32>, vector<32x64xf32>, vector<64x64xf32> -> vector<64x64xf32>
    %82 = arith.addf %76, %81 : vector<64x64xf32>
    %c0_109 = arith.constant 0 : index
    %c0_110 = arith.constant 0 : index
    %83 = vector.load %arg3[%c0_109, %c0_110] : memref<1x64xf32, #tpu.memory_space<vmem>>, vector<1x64xf32>
    %84 = vector.broadcast %83 : vector<1x64xf32> to vector<64x64xf32>
    %85 = arith.addf %82, %84 : vector<64x64xf32>
    %c0_111 = arith.constant 0 : index
    %c0_112 = arith.constant 0 : index
    %c0_113 = arith.constant 0 : index
    %86 = vector.load %arg4[%c0_111, %c0_112, %c0_113] : memref<1x64x64xf32, #tpu.memory_space<vmem>>, vector<1x64x64xf32>
    %87 = vector.shape_cast %86 : vector<1x64x64xf32> to vector<64x64xf32>
    %88 = vector.shape_cast %85 : vector<64x64xf32> to vector<1x64x64xf32>
    tpu.vector_store %arg4[%c0_111, %c0_112, %c0_113], %88 {strides = array<i32>} : memref<1x64x64xf32, #tpu.memory_space<vmem>>, vector<1x64x64xf32>,
    %cst_114 = arith.constant dense<0.000000e+00> : vector<64xf32>
    %89 = vector.multi_reduction <add>, %85, %cst_114 [0] : vector<64x64xf32> to vector<64xf32>
    %90 = vector.shape_cast %89 : vector<64xf32> to vector<1x64xf32>
    %c0_115 = arith.constant 0 : index
    %c0_116 = arith.constant 0 : index
    %c0_117 = arith.constant 0 : index
    %91 = vector.load %arg5[%c0_115, %c0_116, %c0_117] : memref<1x1x64xf32, #tpu.memory_space<vmem>>, vector<1x1x64xf32>
    %92 = vector.shape_cast %91 : vector<1x1x64xf32> to vector<1x64xf32>
    %93 = vector.shape_cast %90 : vector<1x64xf32> to vector<1x1x64xf32>
    tpu.vector_store %arg5[%c0_115, %c0_116, %c0_117], %93 {strides = array<i32>} : memref<1x1x64xf32, #tpu.memory_space<vmem>>, vector<1x1x64xf32>,
    %94 = arith.mulf %85, %85 : vector<64x64xf32>
    %cst_118 = arith.constant dense<0.000000e+00> : vector<64xf32>
    %95 = vector.multi_reduction <add>, %94, %cst_118 [0] : vector<64x64xf32> to vector<64xf32>
    %96 = vector.shape_cast %95 : vector<64xf32> to vector<1x64xf32>
    %c0_119 = arith.constant 0 : index
    %c0_120 = arith.constant 0 : index
    %c0_121 = arith.constant 0 : index
    %97 = vector.load %arg6[%c0_119, %c0_120, %c0_121] : memref<1x1x64xf32, #tpu.memory_space<vmem>>, vector<1x1x64xf32>
    %98 = vector.shape_cast %97 : vector<1x1x64xf32> to vector<1x64xf32>
    %99 = vector.shape_cast %96 : vector<1x64xf32> to vector<1x1x64xf32>
    tpu.vector_store %arg6[%c0_119, %c0_120, %c0_121], %99 {strides = array<i32>} : memref<1x1x64xf32, #tpu.memory_space<vmem>>, vector<1x1x64xf32>,
    return
  }
  func.func @transform_0(%arg0: i32) -> (i32, i32, i32, i32, i32) {
    %c0_i32 = arith.constant 0 : i32
    %c0_i32_0 = arith.constant 0 : i32
    %c0_i32_1 = arith.constant 0 : i32
    %c0_i32_2 = arith.constant 0 : i32
    %c0_i32_3 = arith.constant 0 : i32
    return %arg0, %c0_i32, %c0_i32_0, %c0_i32_1, %c0_i32_2 : i32, i32, i32, i32, i32
  }
  func.func @transform_1(%arg0: i32) -> (i32, i32, i32) {
    %c0_i32 = arith.constant 0 : i32
    %c0_i32_0 = arith.constant 0 : i32
    %c0_i32_1 = arith.constant 0 : i32
    %c0_i32_2 = arith.constant 0 : i32
    return %c0_i32, %c0_i32_0, %c0_i32_1 : i32, i32, i32
  }
  func.func @transform_2(%arg0: i32) -> (i32, i32) {
    %c0_i32 = arith.constant 0 : i32
    %c0_i32_0 = arith.constant 0 : i32
    %c0_i32_1 = arith.constant 0 : i32
    return %c0_i32, %c0_i32_0 : i32, i32
  }
  func.func @transform_3(%arg0: i32) -> (i32, i32, i32) {
    %c0_i32 = arith.constant 0 : i32
    %c0_i32_0 = arith.constant 0 : i32
    %c0_i32_1 = arith.constant 0 : i32
    return %arg0, %c0_i32, %c0_i32_0 : i32, i32, i32
  }
  func.func @transform_4(%arg0: i32) -> (i32, i32, i32) {
    %c0_i32 = arith.constant 0 : i32
    %c0_i32_0 = arith.constant 0 : i32
    %c0_i32_1 = arith.constant 0 : i32
    return %arg0, %c0_i32, %c0_i32_0 : i32, i32, i32
  }
  func.func @transform_5(%arg0: i32) -> (i32, i32, i32) {
    %c0_i32 = arith.constant 0 : i32
    %c0_i32_0 = arith.constant 0 : i32
    %c0_i32_1 = arith.constant 0 : i32
    return %arg0, %c0_i32, %c0_i32_0 : i32, i32, i32
  }
}

module attributes {stable_mosaic.version = 11 : i64} {
  func.func @_bnrelu_conv_kernel(%arg0: i32, %arg1: memref<1x64x64xf32, #tpu.memory_space<vmem>>, %arg2: memref<1x64xf32, #tpu.memory_space<vmem>>, %arg3: memref<1x64xf32, #tpu.memory_space<vmem>>, %arg4: memref<9x64x64xf32, #tpu.memory_space<vmem>>, %arg5: memref<1x64xf32, #tpu.memory_space<vmem>>, %arg6: memref<1x64x64xf32, #tpu.memory_space<vmem>>, %arg7: memref<1x1x64xf32, #tpu.memory_space<vmem>>, %arg8: memref<1x1x64xf32, #tpu.memory_space<vmem>>, %arg9: memref<10x10x64xf32, #tpu.memory_space<vmem>>) attributes {dimension_semantics = [#tpu.dimension_semantics<parallel>], iteration_bounds = array<i64: 2>, scalar_prefetch = 0 : i64, scratch_operands = 1 : i64, tpu.core_type = #tpu.core_type<tc>, window_params = [{transform_indices = @transform_0, window_bounds = array<i64: 1, 64, 64>}, {pipeline_mode = #tpu.pipeline_mode<synchronous>, transform_indices = @transform_1, window_bounds = array<i64: 1, 64>}, {pipeline_mode = #tpu.pipeline_mode<synchronous>, transform_indices = @transform_2, window_bounds = array<i64: 1, 64>}, {pipeline_mode = #tpu.pipeline_mode<synchronous>, transform_indices = @transform_3, window_bounds = array<i64: 9, 64, 64>}, {pipeline_mode = #tpu.pipeline_mode<synchronous>, transform_indices = @transform_4, window_bounds = array<i64: 1, 64>}, {transform_indices = @transform_5, window_bounds = array<i64: 1, 64, 64>}, {transform_indices = @transform_6, window_bounds = array<i64: 1, 1, 64>}, {transform_indices = @transform_7, window_bounds = array<i64: 1, 1, 64>}]} {
    %c0 = arith.constant 0 : index
    %c0_0 = arith.constant 0 : index
    %c0_1 = arith.constant 0 : index
    %0 = vector.load %arg1[%c0, %c0_0, %c0_1] : memref<1x64x64xf32, #tpu.memory_space<vmem>>, vector<1x64x64xf32>
    %1 = vector.shape_cast %0 : vector<1x64x64xf32> to vector<64x64xf32>
    %c0_2 = arith.constant 0 : index
    %c0_3 = arith.constant 0 : index
    %2 = vector.load %arg2[%c0_2, %c0_3] : memref<1x64xf32, #tpu.memory_space<vmem>>, vector<1x64xf32>
    %3 = vector.broadcast %2 : vector<1x64xf32> to vector<64x64xf32>
    %4 = arith.mulf %1, %3 : vector<64x64xf32>
    %c0_4 = arith.constant 0 : index
    %c0_5 = arith.constant 0 : index
    %5 = vector.load %arg3[%c0_4, %c0_5] : memref<1x64xf32, #tpu.memory_space<vmem>>, vector<1x64xf32>
    %6 = vector.broadcast %5 : vector<1x64xf32> to vector<64x64xf32>
    %7 = arith.addf %4, %6 : vector<64x64xf32>
    %cst = arith.constant 0.000000e+00 : f32
    %8 = vector.broadcast %cst : f32 to vector<64x64xf32>
    %9 = arith.maximumf %7, %8 : vector<64x64xf32>
    %cst_6 = arith.constant 0.000000e+00 : f32
    %10 = vector.broadcast %cst_6 : f32 to vector<1x10x64xf32>
    %c0_7 = arith.constant 0 : index
    %c0_8 = arith.constant 0 : index
    %c0_9 = arith.constant 0 : index
    %11 = vector.load %arg9[%c0_7, %c0_8, %c0_9] : memref<10x10x64xf32, #tpu.memory_space<vmem>>, vector<1x10x64xf32>
    tpu.vector_store %arg9[%c0_7, %c0_8, %c0_9], %10 {strides = array<i32>} : memref<10x10x64xf32, #tpu.memory_space<vmem>>, vector<1x10x64xf32>,
    %c9 = arith.constant 9 : index
    %c0_10 = arith.constant 0 : index
    %c0_11 = arith.constant 0 : index
    %12 = vector.load %arg9[%c9, %c0_10, %c0_11] : memref<10x10x64xf32, #tpu.memory_space<vmem>>, vector<1x10x64xf32>
    tpu.vector_store %arg9[%c9, %c0_10, %c0_11], %10 {strides = array<i32>} : memref<10x10x64xf32, #tpu.memory_space<vmem>>, vector<1x10x64xf32>,
    %cst_12 = arith.constant 0.000000e+00 : f32
    %13 = vector.broadcast %cst_12 : f32 to vector<10x1x64xf32>
    %c0_13 = arith.constant 0 : index
    %c0_14 = arith.constant 0 : index
    %c0_15 = arith.constant 0 : index
    %14 = vector.load %arg9[%c0_13, %c0_14, %c0_15] : memref<10x10x64xf32, #tpu.memory_space<vmem>>, vector<10x1x64xf32>
    tpu.vector_store %arg9[%c0_13, %c0_14, %c0_15], %13 {strides = array<i32>} : memref<10x10x64xf32, #tpu.memory_space<vmem>>, vector<10x1x64xf32>,
    %c0_16 = arith.constant 0 : index
    %c9_17 = arith.constant 9 : index
    %c0_18 = arith.constant 0 : index
    %15 = vector.load %arg9[%c0_16, %c9_17, %c0_18] : memref<10x10x64xf32, #tpu.memory_space<vmem>>, vector<10x1x64xf32>
    tpu.vector_store %arg9[%c0_16, %c9_17, %c0_18], %13 {strides = array<i32>} : memref<10x10x64xf32, #tpu.memory_space<vmem>>, vector<10x1x64xf32>,
    %16 = vector.shape_cast %9 : vector<64x64xf32> to vector<8x8x64xf32>
    %c1 = arith.constant 1 : index
    %c1_19 = arith.constant 1 : index
    %c0_20 = arith.constant 0 : index
    %17 = vector.load %arg9[%c1, %c1_19, %c0_20] : memref<10x10x64xf32, #tpu.memory_space<vmem>>, vector<8x8x64xf32>
    tpu.vector_store %arg9[%c1, %c1_19, %c0_20], %16 {strides = array<i32>} : memref<10x10x64xf32, #tpu.memory_space<vmem>>, vector<8x8x64xf32>,
    %c0_21 = arith.constant 0 : index
    %c0_22 = arith.constant 0 : index
    %c0_23 = arith.constant 0 : index
    %18 = vector.load %arg9[%c0_21, %c0_22, %c0_23] : memref<10x10x64xf32, #tpu.memory_space<vmem>>, vector<8x8x64xf32>
    %19 = vector.shape_cast %18 : vector<8x8x64xf32> to vector<64x64xf32>
    %c0_24 = arith.constant 0 : index
    %c0_25 = arith.constant 0 : index
    %c0_26 = arith.constant 0 : index
    %20 = vector.load %arg4[%c0_24, %c0_25, %c0_26] : memref<9x64x64xf32, #tpu.memory_space<vmem>>, vector<1x64x64xf32>
    %21 = vector.shape_cast %20 : vector<1x64x64xf32> to vector<64x64xf32>
    %cst_27 = arith.constant dense<0.000000e+00> : vector<64x64xf32>
    %22 = tpu.matmul %19, %21, %cst_27 {dimension_numbers = #tpu.dot_dimension_numbers<[1], [0], [0], [1], [0, 0, 1, 1], [], []>} : vector<64x64xf32>, vector<64x64xf32>, vector<64x64xf32> -> vector<64x64xf32>
    %c0_28 = arith.constant 0 : index
    %c1_29 = arith.constant 1 : index
    %c0_30 = arith.constant 0 : index
    %23 = vector.load %arg9[%c0_28, %c1_29, %c0_30] : memref<10x10x64xf32, #tpu.memory_space<vmem>>, vector<8x8x64xf32>
    %24 = vector.shape_cast %23 : vector<8x8x64xf32> to vector<64x64xf32>
    %c1_31 = arith.constant 1 : index
    %c0_32 = arith.constant 0 : index
    %c0_33 = arith.constant 0 : index
    %25 = vector.load %arg4[%c1_31, %c0_32, %c0_33] : memref<9x64x64xf32, #tpu.memory_space<vmem>>, vector<1x64x64xf32>
    %26 = vector.shape_cast %25 : vector<1x64x64xf32> to vector<64x64xf32>
    %cst_34 = arith.constant dense<0.000000e+00> : vector<64x64xf32>
    %27 = tpu.matmul %24, %26, %cst_34 {dimension_numbers = #tpu.dot_dimension_numbers<[1], [0], [0], [1], [0, 0, 1, 1], [], []>} : vector<64x64xf32>, vector<64x64xf32>, vector<64x64xf32> -> vector<64x64xf32>
    %28 = arith.addf %22, %27 : vector<64x64xf32>
    %c0_35 = arith.constant 0 : index
    %c2 = arith.constant 2 : index
    %c0_36 = arith.constant 0 : index
    %29 = vector.load %arg9[%c0_35, %c2, %c0_36] : memref<10x10x64xf32, #tpu.memory_space<vmem>>, vector<8x8x64xf32>
    %30 = vector.shape_cast %29 : vector<8x8x64xf32> to vector<64x64xf32>
    %c2_37 = arith.constant 2 : index
    %c0_38 = arith.constant 0 : index
    %c0_39 = arith.constant 0 : index
    %31 = vector.load %arg4[%c2_37, %c0_38, %c0_39] : memref<9x64x64xf32, #tpu.memory_space<vmem>>, vector<1x64x64xf32>
    %32 = vector.shape_cast %31 : vector<1x64x64xf32> to vector<64x64xf32>
    %cst_40 = arith.constant dense<0.000000e+00> : vector<64x64xf32>
    %33 = tpu.matmul %30, %32, %cst_40 {dimension_numbers = #tpu.dot_dimension_numbers<[1], [0], [0], [1], [0, 0, 1, 1], [], []>} : vector<64x64xf32>, vector<64x64xf32>, vector<64x64xf32> -> vector<64x64xf32>
    %34 = arith.addf %28, %33 : vector<64x64xf32>
    %c1_41 = arith.constant 1 : index
    %c0_42 = arith.constant 0 : index
    %c0_43 = arith.constant 0 : index
    %35 = vector.load %arg9[%c1_41, %c0_42, %c0_43] : memref<10x10x64xf32, #tpu.memory_space<vmem>>, vector<8x8x64xf32>
    %36 = vector.shape_cast %35 : vector<8x8x64xf32> to vector<64x64xf32>
    %c3 = arith.constant 3 : index
    %c0_44 = arith.constant 0 : index
    %c0_45 = arith.constant 0 : index
    %37 = vector.load %arg4[%c3, %c0_44, %c0_45] : memref<9x64x64xf32, #tpu.memory_space<vmem>>, vector<1x64x64xf32>
    %38 = vector.shape_cast %37 : vector<1x64x64xf32> to vector<64x64xf32>
    %cst_46 = arith.constant dense<0.000000e+00> : vector<64x64xf32>
    %39 = tpu.matmul %36, %38, %cst_46 {dimension_numbers = #tpu.dot_dimension_numbers<[1], [0], [0], [1], [0, 0, 1, 1], [], []>} : vector<64x64xf32>, vector<64x64xf32>, vector<64x64xf32> -> vector<64x64xf32>
    %40 = arith.addf %34, %39 : vector<64x64xf32>
    %c1_47 = arith.constant 1 : index
    %c1_48 = arith.constant 1 : index
    %c0_49 = arith.constant 0 : index
    %41 = vector.load %arg9[%c1_47, %c1_48, %c0_49] : memref<10x10x64xf32, #tpu.memory_space<vmem>>, vector<8x8x64xf32>
    %42 = vector.shape_cast %41 : vector<8x8x64xf32> to vector<64x64xf32>
    %c4 = arith.constant 4 : index
    %c0_50 = arith.constant 0 : index
    %c0_51 = arith.constant 0 : index
    %43 = vector.load %arg4[%c4, %c0_50, %c0_51] : memref<9x64x64xf32, #tpu.memory_space<vmem>>, vector<1x64x64xf32>
    %44 = vector.shape_cast %43 : vector<1x64x64xf32> to vector<64x64xf32>
    %cst_52 = arith.constant dense<0.000000e+00> : vector<64x64xf32>
    %45 = tpu.matmul %42, %44, %cst_52 {dimension_numbers = #tpu.dot_dimension_numbers<[1], [0], [0], [1], [0, 0, 1, 1], [], []>} : vector<64x64xf32>, vector<64x64xf32>, vector<64x64xf32> -> vector<64x64xf32>
    %46 = arith.addf %40, %45 : vector<64x64xf32>
    %c1_53 = arith.constant 1 : index
    %c2_54 = arith.constant 2 : index
    %c0_55 = arith.constant 0 : index
    %47 = vector.load %arg9[%c1_53, %c2_54, %c0_55] : memref<10x10x64xf32, #tpu.memory_space<vmem>>, vector<8x8x64xf32>
    %48 = vector.shape_cast %47 : vector<8x8x64xf32> to vector<64x64xf32>
    %c5 = arith.constant 5 : index
    %c0_56 = arith.constant 0 : index
    %c0_57 = arith.constant 0 : index
    %49 = vector.load %arg4[%c5, %c0_56, %c0_57] : memref<9x64x64xf32, #tpu.memory_space<vmem>>, vector<1x64x64xf32>
    %50 = vector.shape_cast %49 : vector<1x64x64xf32> to vector<64x64xf32>
    %cst_58 = arith.constant dense<0.000000e+00> : vector<64x64xf32>
    %51 = tpu.matmul %48, %50, %cst_58 {dimension_numbers = #tpu.dot_dimension_numbers<[1], [0], [0], [1], [0, 0, 1, 1], [], []>} : vector<64x64xf32>, vector<64x64xf32>, vector<64x64xf32> -> vector<64x64xf32>
    %52 = arith.addf %46, %51 : vector<64x64xf32>
    %c2_59 = arith.constant 2 : index
    %c0_60 = arith.constant 0 : index
    %c0_61 = arith.constant 0 : index
    %53 = vector.load %arg9[%c2_59, %c0_60, %c0_61] : memref<10x10x64xf32, #tpu.memory_space<vmem>>, vector<8x8x64xf32>
    %54 = vector.shape_cast %53 : vector<8x8x64xf32> to vector<64x64xf32>
    %c6 = arith.constant 6 : index
    %c0_62 = arith.constant 0 : index
    %c0_63 = arith.constant 0 : index
    %55 = vector.load %arg4[%c6, %c0_62, %c0_63] : memref<9x64x64xf32, #tpu.memory_space<vmem>>, vector<1x64x64xf32>
    %56 = vector.shape_cast %55 : vector<1x64x64xf32> to vector<64x64xf32>
    %cst_64 = arith.constant dense<0.000000e+00> : vector<64x64xf32>
    %57 = tpu.matmul %54, %56, %cst_64 {dimension_numbers = #tpu.dot_dimension_numbers<[1], [0], [0], [1], [0, 0, 1, 1], [], []>} : vector<64x64xf32>, vector<64x64xf32>, vector<64x64xf32> -> vector<64x64xf32>
    %58 = arith.addf %52, %57 : vector<64x64xf32>
    %c2_65 = arith.constant 2 : index
    %c1_66 = arith.constant 1 : index
    %c0_67 = arith.constant 0 : index
    %59 = vector.load %arg9[%c2_65, %c1_66, %c0_67] : memref<10x10x64xf32, #tpu.memory_space<vmem>>, vector<8x8x64xf32>
    %60 = vector.shape_cast %59 : vector<8x8x64xf32> to vector<64x64xf32>
    %c7 = arith.constant 7 : index
    %c0_68 = arith.constant 0 : index
    %c0_69 = arith.constant 0 : index
    %61 = vector.load %arg4[%c7, %c0_68, %c0_69] : memref<9x64x64xf32, #tpu.memory_space<vmem>>, vector<1x64x64xf32>
    %62 = vector.shape_cast %61 : vector<1x64x64xf32> to vector<64x64xf32>
    %cst_70 = arith.constant dense<0.000000e+00> : vector<64x64xf32>
    %63 = tpu.matmul %60, %62, %cst_70 {dimension_numbers = #tpu.dot_dimension_numbers<[1], [0], [0], [1], [0, 0, 1, 1], [], []>} : vector<64x64xf32>, vector<64x64xf32>, vector<64x64xf32> -> vector<64x64xf32>
    %64 = arith.addf %58, %63 : vector<64x64xf32>
    %c2_71 = arith.constant 2 : index
    %c2_72 = arith.constant 2 : index
    %c0_73 = arith.constant 0 : index
    %65 = vector.load %arg9[%c2_71, %c2_72, %c0_73] : memref<10x10x64xf32, #tpu.memory_space<vmem>>, vector<8x8x64xf32>
    %66 = vector.shape_cast %65 : vector<8x8x64xf32> to vector<64x64xf32>
    %c8 = arith.constant 8 : index
    %c0_74 = arith.constant 0 : index
    %c0_75 = arith.constant 0 : index
    %67 = vector.load %arg4[%c8, %c0_74, %c0_75] : memref<9x64x64xf32, #tpu.memory_space<vmem>>, vector<1x64x64xf32>
    %68 = vector.shape_cast %67 : vector<1x64x64xf32> to vector<64x64xf32>
    %cst_76 = arith.constant dense<0.000000e+00> : vector<64x64xf32>
    %69 = tpu.matmul %66, %68, %cst_76 {dimension_numbers = #tpu.dot_dimension_numbers<[1], [0], [0], [1], [0, 0, 1, 1], [], []>} : vector<64x64xf32>, vector<64x64xf32>, vector<64x64xf32> -> vector<64x64xf32>
    %70 = arith.addf %64, %69 : vector<64x64xf32>
    %c0_77 = arith.constant 0 : index
    %c0_78 = arith.constant 0 : index
    %71 = vector.load %arg5[%c0_77, %c0_78] : memref<1x64xf32, #tpu.memory_space<vmem>>, vector<1x64xf32>
    %72 = vector.broadcast %71 : vector<1x64xf32> to vector<64x64xf32>
    %73 = arith.addf %70, %72 : vector<64x64xf32>
    %c0_79 = arith.constant 0 : index
    %c0_80 = arith.constant 0 : index
    %c0_81 = arith.constant 0 : index
    %74 = vector.load %arg6[%c0_79, %c0_80, %c0_81] : memref<1x64x64xf32, #tpu.memory_space<vmem>>, vector<1x64x64xf32>
    %75 = vector.shape_cast %74 : vector<1x64x64xf32> to vector<64x64xf32>
    %76 = vector.shape_cast %73 : vector<64x64xf32> to vector<1x64x64xf32>
    tpu.vector_store %arg6[%c0_79, %c0_80, %c0_81], %76 {strides = array<i32>} : memref<1x64x64xf32, #tpu.memory_space<vmem>>, vector<1x64x64xf32>,
    %cst_82 = arith.constant dense<0.000000e+00> : vector<64xf32>
    %77 = vector.multi_reduction <add>, %73, %cst_82 [0] : vector<64x64xf32> to vector<64xf32>
    %78 = vector.shape_cast %77 : vector<64xf32> to vector<1x64xf32>
    %c0_83 = arith.constant 0 : index
    %c0_84 = arith.constant 0 : index
    %c0_85 = arith.constant 0 : index
    %79 = vector.load %arg7[%c0_83, %c0_84, %c0_85] : memref<1x1x64xf32, #tpu.memory_space<vmem>>, vector<1x1x64xf32>
    %80 = vector.shape_cast %79 : vector<1x1x64xf32> to vector<1x64xf32>
    %81 = vector.shape_cast %78 : vector<1x64xf32> to vector<1x1x64xf32>
    tpu.vector_store %arg7[%c0_83, %c0_84, %c0_85], %81 {strides = array<i32>} : memref<1x1x64xf32, #tpu.memory_space<vmem>>, vector<1x1x64xf32>,
    %82 = arith.mulf %73, %73 : vector<64x64xf32>
    %cst_86 = arith.constant dense<0.000000e+00> : vector<64xf32>
    %83 = vector.multi_reduction <add>, %82, %cst_86 [0] : vector<64x64xf32> to vector<64xf32>
    %84 = vector.shape_cast %83 : vector<64xf32> to vector<1x64xf32>
    %c0_87 = arith.constant 0 : index
    %c0_88 = arith.constant 0 : index
    %c0_89 = arith.constant 0 : index
    %85 = vector.load %arg8[%c0_87, %c0_88, %c0_89] : memref<1x1x64xf32, #tpu.memory_space<vmem>>, vector<1x1x64xf32>
    %86 = vector.shape_cast %85 : vector<1x1x64xf32> to vector<1x64xf32>
    %87 = vector.shape_cast %84 : vector<1x64xf32> to vector<1x1x64xf32>
    tpu.vector_store %arg8[%c0_87, %c0_88, %c0_89], %87 {strides = array<i32>} : memref<1x1x64xf32, #tpu.memory_space<vmem>>, vector<1x1x64xf32>,
    return
  }
  func.func @transform_0(%arg0: i32) -> (i32, i32, i32) {
    %c0_i32 = arith.constant 0 : i32
    %c0_i32_0 = arith.constant 0 : i32
    %c0_i32_1 = arith.constant 0 : i32
    return %arg0, %c0_i32, %c0_i32_0 : i32, i32, i32
  }
  func.func @transform_1(%arg0: i32) -> (i32, i32) {
    %c0_i32 = arith.constant 0 : i32
    %c0_i32_0 = arith.constant 0 : i32
    %c0_i32_1 = arith.constant 0 : i32
    return %c0_i32, %c0_i32_0 : i32, i32
  }
  func.func @transform_2(%arg0: i32) -> (i32, i32) {
    %c0_i32 = arith.constant 0 : i32
    %c0_i32_0 = arith.constant 0 : i32
    %c0_i32_1 = arith.constant 0 : i32
    return %c0_i32, %c0_i32_0 : i32, i32
  }
  func.func @transform_3(%arg0: i32) -> (i32, i32, i32) {
    %c0_i32 = arith.constant 0 : i32
    %c0_i32_0 = arith.constant 0 : i32
    %c0_i32_1 = arith.constant 0 : i32
    %c0_i32_2 = arith.constant 0 : i32
    return %c0_i32, %c0_i32_0, %c0_i32_1 : i32, i32, i32
  }
  func.func @transform_4(%arg0: i32) -> (i32, i32) {
    %c0_i32 = arith.constant 0 : i32
    %c0_i32_0 = arith.constant 0 : i32
    %c0_i32_1 = arith.constant 0 : i32
    return %c0_i32, %c0_i32_0 : i32, i32
  }
  func.func @transform_5(%arg0: i32) -> (i32, i32, i32) {
    %c0_i32 = arith.constant 0 : i32
    %c0_i32_0 = arith.constant 0 : i32
    %c0_i32_1 = arith.constant 0 : i32
    return %arg0, %c0_i32, %c0_i32_0 : i32, i32, i32
  }
  func.func @transform_6(%arg0: i32) -> (i32, i32, i32) {
    %c0_i32 = arith.constant 0 : i32
    %c0_i32_0 = arith.constant 0 : i32
    %c0_i32_1 = arith.constant 0 : i32
    return %arg0, %c0_i32, %c0_i32_0 : i32, i32, i32
  }
  func.func @transform_7(%arg0: i32) -> (i32, i32, i32) {
    %c0_i32 = arith.constant 0 : i32
    %c0_i32_0 = arith.constant 0 : i32
    %c0_i32_1 = arith.constant 0 : i32
    return %arg0, %c0_i32, %c0_i32_0 : i32, i32, i32
  }
}

</mosaic_0001>

<bundles_post_ra>
// kernel: tile.20
= control target key start
LH: loop header
LB: loop body
LE: loop exit
PB: predicated region body
PF: predicated region fallthrough
CT: control target
= control target key end

     0   :  { %s22_s0 = inlined_call_operand.vmem [shape: f32[8], index: 0, kind: input, shape index: {}]   ;;  %s23_s1 = inlined_call_operand.vmem [shape: f32[8,8], index: 1, kind: output, shape index: {}]  }
   0x1   :  { %v4_v0 = vld [vmem:[%s22_s0] ss:$0 sm:$0xff] }
   0x2   :  { %5 = vst [vmem:[%s23_s1] sm:$0xff] %v4_v0 }

// kernel: tile.21
= control target key start
LH: loop header
LB: loop body
LE: loop exit
PB: predicated region body
PF: predicated region fallthrough
CT: control target
= control target key end

     0   :  { %s67_s10 = smov 56   ;;  %s68_s11 = smov 40   ;;  %vm3_vm0 = vcmask 64512   ;;  %vm9_vm1 = vcmask 523712   ;;  %vm15_vm2 = vcmask 458112   ;;  %vm21_vm3 = vcmask 392512   ;;  %s111_s0 = inlined_call_operand.vmem [shape: f32[8,8], index: 0, kind: input, shape index: {}]   ;;  %s112_s1 = inlined_call_operand.vmem [shape: f32[1,64], index: 1, kind: output, shape index: {}]  }
   0x1   :  { %v53_v0 = vld [vmem:[%s111_s0 + $0x7] sm:$0x1]   ;;  %v55_v1 = vld [vmem:[%s111_s0 + $0x5] sm:$0x1]   ;;  %v54_v2 = vld [vmem:[%s111_s0 + $0x6] sm:$0x1]  }
   0x2   :  { %7 = vrot.lane.b32.xlu0 %v53_v0, %s67_s10  ;;  %19 = vrot.lane.b32.xlu1 %v55_v1, %s68_s11  ;;  %v56_v3 = vld [vmem:[%s111_s0 + $0x4] sm:$0x1]   ;;  %v2_v4 = vld [vmem:[%s111_s0] sm:$0x1]   ;;  %s69_s18 = smov 48   ;;  %s70_s19 = smov 32  }
   0x3   :  { %4 = vst.msk [vmem:[#allocation0] sm:$0x1] %vm3_vm0, %v2_v4   ;;  %v57_v5 = vld [vmem:[%s111_s0 + $0x3] sm:$0x1]   ;;  %v58_v6 = vld [vmem:[%s111_s0 + $0x2] sm:$0x1]  }
   0x4   :  { %s71_s24 = smov 24   ;;  %s72_s25 = smov 16   ;;  %v59_v7 = vld [vmem:[%s111_s0 + $0x1] sm:$0x1]   ;;  %vm27_vm4 = vcmask 326912   ;;  %vm33_vm5 = vcmask 261312  }
   0x5   :  { %s73_s0 = smov 8   ;;  %vm39_vm6 = vcmask 195712   ;;  %vm45_vm7 = vcmask 130112  }
   0x6   :  { %13 = vrot.lane.b32.xlu0 %v54_v2, %s69_s18  ;;  %25 = vrot.lane.b32.xlu1 %v56_v3, %s70_s19 }
   0xa   :  { %31 = vrot.lane.b32.xlu0 %v57_v5, %s71_s24  ;;  %37 = vrot.lane.b32.xlu1 %v58_v6, %s72_s25 }
   0xe   :  { %43 = vrot.lane.b32.xlu0 %v59_v7, %s73_s0 }
  0x74   :  { %v8_v8 = vpop.permute.xlu0 %7   ;;  %v20_v9 = vpop.permute.xlu1 %19  }
  0x75   :  { %10 = vst.msk [vmem:[#allocation0] sm:$0x1] %vm9_vm1, %v8_v8  }
  0x78   :  { %v14_v10 = vpop.permute.xlu0 %13   ;;  %v26_v11 = vpop.permute.xlu1 %25  }
  0x79   :  { %16 = vst.msk [vmem:[#allocation0] sm:$0x1] %vm15_vm2, %v14_v10  }
  0x7a   :  { %22 = vst.msk [vmem:[#allocation0] sm:$0x1] %vm21_vm3, %v20_v9  }
  0x7b   :  { %28 = vst.msk [vmem:[#allocation0] sm:$0x1] %vm27_vm4, %v26_v11  }
  0x7c   :  { %v32_v12 = vpop.permute.xlu0 %31   ;;  %v38_v13 = vpop.permute.xlu1 %37  }
  0x7d   :  { %34 = vst.msk [vmem:[#allocation0] sm:$0x1] %vm33_vm5, %v32_v12  }
  0x7e   :  { %40 = vst.msk [vmem:[#allocation0] sm:$0x1] %vm39_vm6, %v38_v13  }
  0x80   :  { %v44_v14 = vpop.permute.xlu0 %43  }
  0x81   :  { %46 = vst.msk [vmem:[#allocation0] sm:$0x1] %vm45_vm7, %v44_v14  }
  0x88   :  { %v50_v15 = vld [vmem:[#allocation0] sm:$0x1] }
  0x89   :  { %52 = vst [vmem:[%s112_s1] sm:$0x1] %v50_v15 }

// kernel: down3d_forward.2
= control target key start
LH: loop header
LB: loop body
LE: loop exit
PB: predicated region body
PF: predicated region fallthrough
CT: control target
= control target key end

     0   :  { %s2572_s18 = smov 0   ;;  %s3045_s0 = inlined_call_operand.vmem [shape: f32[2,8,8,8,32], index: 0, kind: input, shape index: {}]   ;;  %s3046_s1 = inlined_call_operand.vmem [shape: f32[9,32,64], index: 1, kind: input, shape index: {}]   ;;  %s3047_s2 = inlined_call_operand.vmem [shape: f32[1,64], index: 2, kind: input, shape index: {}]   ;;  %s3048_s3 = inlined_call_operand.vmem [shape: f32[2,64,64], index: 3, kind: output, shape index: {0}]   ;;  %s3049_s4 = inlined_call_operand.vmem [shape: f32[2,1,64], index: 4, kind: output, shape index: {1}]   ;;  %s3050_s5 = inlined_call_operand.vmem [shape: f32[2,1,64], index: 5, kind: output, shape index: {2}]  }
   0x1 LB: > { %s1922_s19 = sadd.s32 4294967295, %s2539_s18   ;;  %p1926_p0 = scmp.ge.s32.totalorder %s2539_s18, 1  ;;  %s2539_s18 = sphi %s2572_s18, %s16_s18  }
   0x2   : > { %p192_p1 = scmp.lt.s32.totalorder %s2539_s18, 3 }
   0x4   : > { %p193_p2 = pnand %p1926_p0, %p192_p1 }
   0x5   : > { %v1987_v0 = vld [vmem:[%s3046_s1 + $0x20] sm:$0xff] (!%p193_p2)  ;;  %v1988_v1 = vld [vmem:[%s3046_s1 + $0x28] sm:$0xff] (!%p193_p2)  ;;  %vm369_vm0 = vcmask (!%p193_p2), 261120   ;;  %vm371_vm1 = vcmask (!%p193_p2), 254976   ;;  %v1989_v5 = vld [vmem:[%s3046_s1 + $0x30] sm:$0xff] (!%p193_p2)  ;;  %v2541_v7 = vmov (!%p193_p2), 0.0  }
   0x6   : > { %196 = sbr.rel (%p193_p2) target bundleno = 348 (0x15c), region = 32  ;;  %v2031_v2 = vld [vmem:[%s3046_s1 + $0x80] sm:$0xff] (!%p193_p2)  ;;  %v2384_v3 = vpack.c.bf16 (!%p193_p2), %v1988_v1, %v1987_v0  ;;  %v2032_v4 = vld [vmem:[%s3046_s1 + $0x88] sm:$0xff] (!%p193_p2)  ;;  %v1990_v6 = vld [vmem:[%s3046_s1 + $0x38] sm:$0xff] (!%p193_p2)  ;;  %370 = vst.msk [vmem:[#allocation2] sm:$0xff] (!%p193_p2), %vm369_vm0, %v2541_v7  ;;  %vm376_vm2 = vcmask (!%p193_p2), 253952  }
   0x7   : > { %372 = vst.msk [vmem:[#allocation2 + $0x8] sm:$0x3] (!%p193_p2), %vm371_vm1, %v2541_v7  ;;  %375 = vst.msk [vmem:[#allocation2 + $0x98] sm:$0x3] (!%p193_p2), %vm371_vm1, %v2541_v7  ;;  %p2602_p3 = scmp.lt.s32.totalorder (!%p193_p2), %s1922_s19, 1  ;;  %v2606_v8 = vpack.c.bf16 (!%p193_p2), %v2032_v4, %v2031_v2  ;;  %v2388_v9 = vpack.c.bf16 (!%p193_p2), %v1990_v6, %v1989_v5  ;;  %v2033_v10 = vld [vmem:[%s3046_s1 + $0x90] sm:$0xff] (!%p193_p2) }
   0x8   : > { %374 = vst.msk [vmem:[#allocation2 + $0x90] sm:$0xff] (!%p193_p2), %vm369_vm0, %v2541_v7  ;;  %v2034_v11 = vld [vmem:[%s3046_s1 + $0x98] sm:$0xff] (!%p193_p2)  ;;  %v414_v12 = vld [vmem:[%s3046_s1] sm:$0xff] (!%p193_p2)  ;;  %2385 = vmatprep.subr.bf16.mxu1 (!%p193_p2), %v2384_v3  ;;  %v415_v14 = vld [vmem:[%s3046_s1 + $0x8] sm:$0xff] (!%p193_p2)  ;;  %vm1755_vm3 = vcmask (!%p193_p2), 523264   ;;  %vm1785_vm4 = vcmask (!%p193_p2), 516096  }
   0x9   : > { %387 = vst.msk [vmem:[#allocation2 + $0x9] sm:$0x1] (!%p193_p2), %vm376_vm2, %v2541_v7  ;;  %377 = vst.msk [vmem:[#allocation2] sm:$0x1] (!%p193_p2), %vm376_vm2, %v2541_v7  ;;  %v2637_v13 = vpack.c.bf16 (!%p193_p2), %v2034_v11, %v2033_v10  ;;  %v2043_v15 = vld [vmem:[%s3046_s1 + $0xa0] sm:$0xff] (!%p193_p2)  ;;  %v2044_v16 = vld [vmem:[%s3046_s1 + $0xa8] sm:$0xff] (!%p193_p2)  ;;  %2417 = vmatprep.subr.bf16.mxu0 (!%p193_p2), %v2606_v8  ;;  %2387 = vmatpush3.bf16.msra.mxu1 (!%p193_p2), %v2384_v3  ;;  %v2663_v17 = vpack.c.bf16 (!%p193_p2), %v415_v14, %v414_v12 }
   0xa   : > { %378 = vst.msk [vmem:[#allocation2 + $0x10] sm:$0x1] (!%p193_p2), %vm376_vm2, %v2541_v7  ;;  %379 = vst.msk [vmem:[#allocation2 + $0x20] sm:$0x1] (!%p193_p2), %vm376_vm2, %v2541_v7  ;;  %2419 = vmatpush3.bf16.msra.mxu0 (!%p193_p2), %v2606_v8  ;;  %2389 = vmatprep.subr.bf16.mxu1 (!%p193_p2), %v2388_v9  ;;  %v2665_v18 = vpack.c.bf16 (!%p193_p2), %v2044_v16, %v2043_v15 }
   0xb   : > { %380 = vst.msk [vmem:[#allocation2 + $0x30] sm:$0x1] (!%p193_p2), %vm376_vm2, %v2541_v7  ;;  %381 = vst.msk [vmem:[#allocation2 + $0x40] sm:$0x1] (!%p193_p2), %vm376_vm2, %v2541_v7  ;;  %2421 = vmatprep.subr.bf16.mxu0 (!%p193_p2), %v2637_v13 }
   0xc   : > { %382 = vst.msk [vmem:[#allocation2 + $0x50] sm:$0x1] (!%p193_p2), %vm376_vm2, %v2541_v7  ;;  %383 = vst.msk [vmem:[#allocation2 + $0x60] sm:$0x1] (!%p193_p2), %vm376_vm2, %v2541_v7 }
   0xd   : > { %384 = vst.msk [vmem:[#allocation2 + $0x70] sm:$0x1] %vm376_vm2, %v2541_v7  ;;  %385 = vst.msk [vmem:[#allocation2 + $0x80] sm:$0x1] %vm376_vm2, %v2541_v7  ;;  %s3053_s19 = smov (!%p2602_p3, %s1922_s19), 1  ;;  %2391 = vmatpush3.bf16.msra.mxu1 %v2388_v9 }
   0xe   : > { %388 = vst.msk [vmem:[#allocation2 + $0x19] sm:$0x1] %vm376_vm2, %v2541_v7  ;;  %389 = vst.msk [vmem:[#allocation2 + $0x29] sm:$0x1] %vm376_vm2, %v2541_v7  ;;  %s2094_s22 = sshll.u32 %s3053_s19, 9  ;;  %v418_v22 = vld [vmem:[#allocation2 + $0x1] sm:$0xff]  ;;  %2423 = vmatpush3.bf16.msra.mxu0 %v2637_v13  ;;  %2393 = vmatprep.subr.bf16.mxu1 %v2663_v17  ;;  %s238_s11 = scalar_lea.vmem %s3049_s4, %s3053_s19 }
   0xf   : > { %390 = vst.msk [vmem:[#allocation2 + $0x39] sm:$0x1] %vm376_vm2, %v2541_v7  ;;  %391 = vst.msk [vmem:[#allocation2 + $0x49] sm:$0x1] %vm376_vm2, %v2541_v7  ;;  %s2661_s25 = scalar_lea.vmem %s3045_s0, %s2094_s22  ;;  %2212 = vmatprep.mubr.msk.f32.mxu1 %vm369_vm0, %v418_v22  ;;  %2425 = vmatprep.subr.bf16.mxu0 %v2665_v18  ;;  %s2095_s28 = sshll.u32 %s3053_s19, 6 }
  0x10   : > { %392 = vst.msk [vmem:[#allocation2 + $0x59] sm:$0x1] %vm376_vm2, %v2541_v7  ;;  %393 = vst.msk [vmem:[#allocation2 + $0x69] sm:$0x1] %vm376_vm2, %v2541_v7  ;;  %v242_v19 = vld [vmem:[%s2661_s25] sm:$0xff]  ;;  %v243_v26 = vld [vmem:[%s2661_s25 + $0x8] sm:$0xff]  ;;  %s3000_s8 = scalar_lea.vmem %s3048_s3, %s2095_s28  ;;  %s241_s14 = scalar_lea.vmem %s3050_s5, %s3053_s19 }
  0x11   : > { %394 = vst.msk [vmem:[#allocation2 + $0x79] sm:$0x1] %vm376_vm2, %v2541_v7  ;;  %395 = vst.msk [vmem:[#allocation2 + $0x89] sm:$0x1] %vm376_vm2, %v2541_v7  ;;  %v1931_v20 = vld [vmem:[%s2661_s25 + $0x40] sm:$0xff]  ;;  %v1932_v27 = vld [vmem:[%s2661_s25 + $0x48] sm:$0xff] }
  0x12   : > { %396 = vst.msk [vmem:[#allocation2 + $0x99] sm:$0x1] %vm376_vm2, %v2541_v7  ;;  %386 = vst.msk [vmem:[#allocation2 + $0x90] sm:$0x1] %vm376_vm2, %v2541_v7  ;;  %v1939_v21 = vld [vmem:[%s2661_s25 + $0x80] sm:$0xff]  ;;  %v259_v23 = vmax.f32 %v242_v19, %v1931_v20  ;;  %v1940_v28 = vld [vmem:[%s2661_s25 + $0x88] sm:$0xff]  ;;  %v260_v30 = vmax.f32 %v243_v26, %v1932_v27 }
  0x13   : > { %v1947_v24 = vld [vmem:[%s2661_s25 + $0xc0] sm:$0xff]  ;;  %v1948_v32 = vld [vmem:[%s2661_s25 + $0xc8] sm:$0xff]  ;;  %v244_v33 = vld [vmem:[%s2661_s25 + $0x10] sm:$0xff] }
  0x14   : > { %v276_v25 = vmax.f32 %v259_v23, %v1939_v21  ;;  %v1955_v29 = vld [vmem:[%s2661_s25 + $0x100] sm:$0xff]  ;;  %v277_v35 = vmax.f32 %v260_v30, %v1940_v28  ;;  %v1933_v36 = vld [vmem:[%s2661_s25 + $0x50] sm:$0xff]  ;;  %v1956_v40 = vld [vmem:[%s2661_s25 + $0x108] sm:$0xff] }
  0x15   : > { %v1963_v34 = vld [vmem:[%s2661_s25 + $0x140] sm:$0xff]  ;;  %v1941_v37 = vld [vmem:[%s2661_s25 + $0x90] sm:$0xff]  ;;  %v261_v41 = vmax.f32 %v244_v33, %v1933_v36  ;;  %v245_v44 = vld [vmem:[%s2661_s25 + $0x18] sm:$0xff] }
  0x16   : > { %v293_v31 = vmax.f32 %v276_v25, %v1947_v24  ;;  %v1971_v39 = vld [vmem:[%s2661_s25 + $0x180] sm:$0xff]  ;;  %v294_v42 = vmax.f32 %v277_v35, %v1948_v32  ;;  %v1949_v43 = vld [vmem:[%s2661_s25 + $0xd0] sm:$0xff]  ;;  %v1934_v45 = vld [vmem:[%s2661_s25 + $0x58] sm:$0xff] }
  0x17   : > { %v1979_v47 = vld [vmem:[%s2661_s25 + $0x1c0] sm:$0xff]  ;;  %v1964_v48 = vld [vmem:[%s2661_s25 + $0x148] sm:$0xff]  ;;  %v278_v49 = vmax.f32 %v261_v41, %v1941_v37  ;;  %v262_v50 = vmax.f32 %v245_v44, %v1934_v45  ;;  %v1942_v51 = vld [vmem:[%s2661_s25 + $0x98] sm:$0xff] }
  0x18   : > { %v310_v38 = vmax.f32 %v293_v31, %v1955_v29  ;;  %v311_v52 = vmax.f32 %v294_v42, %v1956_v40  ;;  %v1972_v53 = vld [vmem:[%s2661_s25 + $0x188] sm:$0xff]  ;;  %v1957_v54 = vld [vmem:[%s2661_s25 + $0x110] sm:$0xff]  ;;  %v1950_v55 = vld [vmem:[%s2661_s25 + $0xd8] sm:$0xff] }
  0x19   : > { %v295_v57 = vmax.f32 %v278_v49, %v1949_v43  ;;  %v279_v58 = vmax.f32 %v262_v50, %v1942_v51  ;;  %v246_v59 = vld [vmem:[%s2661_s25 + $0x20] sm:$0xff]  ;;  %v1980_v63 = vld [vmem:[%s2661_s25 + $0x1c8] sm:$0xff]  ;;  %v1965_v0 = vld [vmem:[%s2661_s25 + $0x150] sm:$0xff] }
  0x1a   : > { %v327_v46 = vmax.f32 %v310_v38, %v1963_v34  ;;  %v1935_v60 = vld [vmem:[%s2661_s25 + $0x60] sm:$0xff]  ;;  %v328_v62 = vmax.f32 %v311_v52, %v1964_v48  ;;  %v1958_v1 = vld [vmem:[%s2661_s25 + $0x118] sm:$0xff]  ;;  %v1973_v5 = vld [vmem:[%s2661_s25 + $0x190] sm:$0xff] }
  0x1b   : > { %v1943_v61 = vld [vmem:[%s2661_s25 + $0xa0] sm:$0xff]  ;;  %v263_v2 = vmax.f32 %v246_v59, %v1935_v60  ;;  %v312_v4 = vmax.f32 %v295_v57, %v1957_v54  ;;  %v296_v6 = vmax.f32 %v279_v58, %v1950_v55  ;;  %v247_v9 = vld [vmem:[%s2661_s25 + $0x28] sm:$0xff]  ;;  %v1966_v11 = vld [vmem:[%s2661_s25 + $0x158] sm:$0xff] }
  0x1c   : > { %v344_v56 = vmax.f32 %v327_v46, %v1971_v39  ;;  %v1951_v7 = vld [vmem:[%s2661_s25 + $0xe0] sm:$0xff]  ;;  %v345_v10 = vmax.f32 %v328_v62, %v1972_v53  ;;  %v1936_v14 = vld [vmem:[%s2661_s25 + $0x68] sm:$0xff]  ;;  %v1981_v19 = vld [vmem:[%s2661_s25 + $0x1d0] sm:$0xff] }
  0x1d   : > { %v280_v12 = vmax.f32 %v263_v2, %v1943_v61  ;;  %v1944_v15 = vld [vmem:[%s2661_s25 + $0xa8] sm:$0xff]  ;;  %v329_v16 = vmax.f32 %v312_v4, %v1965_v0  ;;  %v313_v20 = vmax.f32 %v296_v6, %v1958_v1  ;;  %v1974_v21 = vld [vmem:[%s2661_s25 + $0x198] sm:$0xff]  ;;  %v1959_v22 = vld [vmem:[%s2661_s25 + $0x120] sm:$0xff]  ;;  %v264_v24 = vmax.f32 %v247_v9, %v1936_v14 }
  0x1e   : > { %v361_v3 = vmax.f32 %v344_v56, %v1979_v47  ;;  %v416_v23 = vld [vmem:[%s3046_s1 + $0x10] sm:$0xff]  ;;  %v362_v25 = vmax.f32 %v345_v10, %v1980_v63  ;;  %v1952_v27 = vld [vmem:[%s2661_s25 + $0xe8] sm:$0xff]  ;;  %v1967_v32 = vld [vmem:[%s2661_s25 + $0x160] sm:$0xff] }
  0x1f   : > { %v297_v26 = vmax.f32 %v280_v12, %v1951_v7  ;;  %v248_v28 = vld [vmem:[%s2661_s25 + $0x30] sm:$0xff]  ;;  %v346_v30 = vmax.f32 %v329_v16, %v1973_v5  ;;  %v330_v31 = vmax.f32 %v313_v20, %v1966_v11  ;;  %v417_v33 = vld [vmem:[%s3046_s1 + $0x18] sm:$0xff]  ;;  %v281_v34 = vmax.f32 %v264_v24, %v1944_v15  ;;  %v1960_v39 = vld [vmem:[%s2661_s25 + $0x128] sm:$0xff] }
  0x20   : > { %398 = vst.msk [vmem:[#allocation2 + $0x11] sm:$0xff] %vm369_vm0, %v361_v3  ;;  %v1937_v29 = vld [vmem:[%s2661_s25 + $0x70] sm:$0xff]  ;;  %399 = vst.msk [vmem:[#allocation2 + $0x21] sm:$0xff] %vm369_vm0, %v362_v25  ;;  %v1982_v37 = vld [vmem:[%s2661_s25 + $0x1d8] sm:$0xff]  ;;  %v2396_v50 = vpack.c.bf16 %v417_v33, %v416_v23 }
  0x21   : > { %v265_v35 = vmax.f32 %v248_v28, %v1937_v29  ;;  %v1945_v36 = vld [vmem:[%s2661_s25 + $0xb0] sm:$0xff]  ;;  %v314_v38 = vmax.f32 %v297_v26, %v1959_v22  ;;  %v363_v41 = vmax.f32 %v346_v30, %v1981_v19  ;;  %v347_v43 = vmax.f32 %v330_v31, %v1974_v21  ;;  %v1975_v44 = vld [vmem:[%s2661_s25 + $0x1a0] sm:$0xff]  ;;  %v1968_v46 = vld [vmem:[%s2661_s25 + $0x168] sm:$0xff] }
  0x22   : > { %v1953_v40 = vld [vmem:[%s2661_s25 + $0xf0] sm:$0xff]  ;;  %v298_v45 = vmax.f32 %v281_v34, %v1952_v27  ;;  %v249_v48 = vld [vmem:[%s2661_s25 + $0x38] sm:$0xff]  ;;  %v1983_v56 = vld [vmem:[%s2661_s25 + $0x1e0] sm:$0xff] }
  0x23   : > { %v2045_v42 = vld [vmem:[%s3046_s1 + $0xb0] sm:$0xff]  ;;  %v282_v47 = vmax.f32 %v265_v35, %v1945_v36  ;;  %v331_v49 = vmax.f32 %v314_v38, %v1967_v32  ;;  %v1938_v52 = vld [vmem:[%s2661_s25 + $0x78] sm:$0xff]  ;;  %400 = vst.msk [vmem:[#allocation2 + $0x31] sm:$0xff] %vm369_vm0, %v363_v41  ;;  %v364_v55 = vmax.f32 %v347_v43, %v1982_v37  ;;  %v1976_v58 = vld [vmem:[%s2661_s25 + $0x1a8] sm:$0xff] }
  0x24   : > { %v1961_v51 = vld [vmem:[%s2661_s25 + $0x130] sm:$0xff]  ;;  %v1946_v53 = vld [vmem:[%s2661_s25 + $0xb8] sm:$0xff]  ;;  %v315_v57 = vmax.f32 %v298_v45, %v1960_v39  ;;  %v266_v60 = vmax.f32 %v249_v48, %v1938_v52  ;;  %v2007_v3 = vld [vmem:[%s3046_s1 + $0x40] sm:$0xff] }
  0x25   : > { %v2046_v54 = vld [vmem:[%s3046_s1 + $0xb8] sm:$0xff]  ;;  %v299_v59 = vmax.f32 %v282_v47, %v1953_v40  ;;  %v348_v62 = vmax.f32 %v331_v49, %v1975_v44  ;;  %v1969_v63 = vld [vmem:[%s2661_s25 + $0x170] sm:$0xff]  ;;  %401 = vst.msk [vmem:[#allocation2 + $0x41] sm:$0xff] %vm369_vm0, %v364_v55  ;;  %v2008_v4 = vld [vmem:[%s3046_s1 + $0x48] sm:$0xff] }
  0x26   : > { %v1954_v0 = vld [vmem:[%s2661_s25 + $0xf8] sm:$0xff]  ;;  %v332_v1 = vmax.f32 %v315_v57, %v1968_v46  ;;  %v283_v5 = vmax.f32 %v266_v60, %v1946_v53  ;;  %v2428_v6 = vpack.c.bf16 %v2046_v54, %v2045_v42  ;;  %v1984_v9 = vld [vmem:[%s2661_s25 + $0x1e8] sm:$0xff]  ;;  %v1977_v10 = vld [vmem:[%s2661_s25 + $0x1b0] sm:$0xff]  ;;  %v2770_v21 = vpack.c.bf16 %v2008_v4, %v2007_v3 }
  0x27   : > { %v419_v61 = vld [vmem:[#allocation2 + $0x11] sm:$0xff]  ;;  %v316_v2 = vmax.f32 %v299_v59, %v1961_v51  ;;  %v365_v7 = vmax.f32 %v348_v62, %v1983_v56  ;;  %v2756_v12 = vld [vmem:[#allocation2 + $0x21] sm:$0xff] }
  0x28   : > { %2213 = vmatmul.mubr.msk.f32.vlgmr.msra.gmra.mrb[0].mxu1 %vm369_vm0, %v419_v61  ;;  %2292 = vmatprep.mubr.msk.f32.mxu0 %vm369_vm0, %v419_v61  ;;  %v1962_v11 = vld [vmem:[%s2661_s25 + $0x138] sm:$0xff]  ;;  %v2055_v14 = vld [vmem:[%s3046_s1 + $0xc0] sm:$0xff]  ;;  %v349_v15 = vmax.f32 %v332_v1, %v1976_v58  ;;  %v300_v19 = vmax.f32 %v283_v5, %v1954_v0  ;;  %v1985_v20 = vld [vmem:[%s2661_s25 + $0x1f0] sm:$0xff] }
  0x29   : > { %2395 = vmatpush3.bf16.msra.mxu1 %v2663_v17  ;;  %v333_v16 = vmax.f32 %v316_v2, %v1969_v63  ;;  %2293 = vmatmul.mubr.msk.f32.vlgmr.msra.gmra.mrb[0].mxu0 %vm369_vm0, %v2756_v12  ;;  %402 = vst.msk [vmem:[#allocation2 + $0x51] sm:$0xff] %vm369_vm0, %v365_v7  ;;  %v2056_v17 = vld [vmem:[%s3046_s1 + $0xc8] sm:$0xff]  ;;  %v1970_v22 = vld [vmem:[%s2661_s25 + $0x178] sm:$0xff]  ;;  %v2057_v30 = vld [vmem:[%s3046_s1 + $0xd0] sm:$0xff] }
  0x2a   : > { %2397 = vmatprep.subr.bf16.mxu1 %v2396_v50  ;;  %2215 = vmatprep.mubr.msk.f32.mxu1 %vm369_vm0, %v2756_v12  ;;  %v366_v23 = vmax.f32 %v349_v15, %v1984_v9  ;;  %v317_v25 = vmax.f32 %v300_v19, %v1962_v11  ;;  %v2774_v26 = vld [vmem:[#allocation2 + $0x31] sm:$0xff]  ;;  %v2432_v29 = vpack.c.bf16 %v2056_v17, %v2055_v14  ;;  %v2801_v36 = vld [vmem:[#allocation2 + $0x22] sm:$0xff] }
  0x2b   : > { %2427 = vmatpush3.bf16.msra.mxu0 %v2665_v18  ;;  %v350_v24 = vmax.f32 %v333_v16, %v1977_v10  ;;  %v1978_v27 = vld [vmem:[%s2661_s25 + $0x1b8] sm:$0xff]  ;;  %2295 = vmatprep.mubr.msk.f32.mxu0 %vm369_vm0, %v2774_v26  ;;  %v2067_v41 = vld [vmem:[%s3046_s1 + $0xe0] sm:$0xff]  ;;  %v2068_v42 = vld [vmem:[%s3046_s1 + $0xe8] sm:$0xff] }
  0x2c   : > { %2429 = vmatprep.subr.bf16.mxu0 %v2428_v6  ;;  %2216 = vmatmul.mubr.msk.f32.gmra.mrb[2].mxu1 %vm369_vm0, %v2774_v26  ;;  %v2781_v28 = vld [vmem:[#allocation2 + $0x12] sm:$0xff]  ;;  %403 = vst.msk [vmem:[#allocation2 + $0x61] sm:$0xff] %vm369_vm0, %v366_v23  ;;  %v334_v31 = vmax.f32 %v317_v25, %v1970_v22  ;;  %v2787_v32 = vld [vmem:[#allocation2 + $0x41] sm:$0xff]  ;;  %v2091_v25 = vld [vmem:[%s3047_s2] ss:$0 sm:$0xff] }
  0x2d   : > { %2399 = vmatpush3.bf16.msra.mxu1 %v2396_v50  ;;  %v367_v18 = vmax.f32 %v350_v24, %v1985_v20  ;;  %v2058_v33 = vld [vmem:[%s3046_s1 + $0xd8] sm:$0xff]  ;;  %2296 = vmatmul.mubr.msk.f32.gmra.mrb[2].mxu0 %vm369_vm0, %v2787_v32  ;;  %v2822_v44 = vld [vmem:[#allocation2 + $0x42] sm:$0xff]  ;;  %v2009_v48 = vld [vmem:[%s3046_s1 + $0x50] sm:$0xff]  ;;  %v2440_v50 = vpack.c.bf16 %v2068_v42, %v2067_v41 }
  0x2e   : > { %2401 = vmatprep.subr.bf16.mxu1 %v2770_v21  ;;  %v1986_v34 = vld [vmem:[%s2661_s25 + $0x1f8] sm:$0xff]  ;;  %2218 = vmatprep.mubr.msk.f32.mxu1 %vm369_vm0, %v2787_v32  ;;  %v351_v35 = vmax.f32 %v334_v31, %v1978_v27  ;;  %v2436_v39 = vpack.c.bf16 %v2058_v33, %v2057_v30  ;;  %v406_v45 = vld [vmem:[#allocation2] sm:$0xff]  ;;  %v2841_v51 = vld [vmem:[#allocation2 + $0x10] sm:$0xff] }
  0x2f   : > { %404 = vst.msk [vmem:[#allocation2 + $0x71] sm:$0xff] %vm369_vm0, %v367_v18  ;;  %2431 = vmatpush3.bf16.msra.mxu0 %v2428_v6  ;;  %2312 = vmatprep.mubr.msk.f32.mxu0 %vm369_vm0, %v2781_v28  ;;  %v2805_v38 = vld [vmem:[#allocation2 + $0x32] sm:$0xff]  ;;  %v2847_v53 = vld [vmem:[#allocation2 + $0x20] sm:$0xff]  ;;  %v2020_v57 = vld [vmem:[%s3046_s1 + $0x68] sm:$0xff] }
  0x30   : > { %v2803_v37 = vld [vmem:[#allocation2 + $0x51] sm:$0xff]  ;;  %2433 = vmatprep.subr.bf16.mxu0 %v2432_v29  ;;  %v368_v40 = vmax.f32 %v351_v35, %v1986_v34  ;;  %v2019_v56 = vld [vmem:[%s3046_s1 + $0x60] sm:$0xff]  ;;  %v2080_v4 = vld [vmem:[%s3046_s1 + $0x108] sm:$0xff] }
  0x31   : > { %2219 = vmatmul.mubr.msk.f32.gmra.mrb[4].mxu1 %vm369_vm0, %v2803_v37  ;;  %v2826_v46 = vld [vmem:[#allocation2 + $0x52] sm:$0xff]  ;;  %v2870_v60 = vld [vmem:[#allocation2 + $0x40] sm:$0xff]  ;;  %v2408_v61 = vpack.c.bf16 %v2020_v57, %v2019_v56 }
  0x32   : > { %2313 = vmatmul.mubr.msk.f32.vlgmr.msra.gmra.mrb[0].mxu0 %vm369_vm0, %v2801_v36  ;;  %405 = vst.msk [vmem:[#allocation2 + $0x81] sm:$0xff] %vm369_vm0, %v368_v40  ;;  %v2010_v49 = vld [vmem:[%s3046_s1 + $0x58] sm:$0xff]  ;;  %v2864_v58 = vld [vmem:[#allocation2 + $0x30] sm:$0xff]  ;;  %v2079_v3 = vld [vmem:[%s3046_s1 + $0x100] sm:$0xff] }
  0x33   : > { %2435 = vmatpush3.bf16.msra.mxu0 %v2432_v29  ;;  %v2818_v43 = vld [vmem:[#allocation2 + $0x61] sm:$0xff]  ;;  %2315 = vmatprep.mubr.msk.f32.mxu0 %vm369_vm0, %v2805_v38  ;;  %v2404_v54 = vpack.c.bf16 %v2010_v49, %v2009_v48  ;;  %v2069_v62 = vld [vmem:[%s3046_s1 + $0xf0] sm:$0xff]  ;;  %v2070_v63 = vld [vmem:[%s3046_s1 + $0xf8] sm:$0xff]  ;;  %v2448_v10 = vpack.c.bf16 %v2080_v4, %v2079_v3 }
  0x34   : > { %2221 = vmatprep.mubr.msk.f32.mxu1 %vm369_vm0, %v2818_v43  ;;  %2437 = vmatprep.subr.bf16.mxu0 %v2436_v39  ;;  %v2845_v52 = vld [vmem:[#allocation2 + $0x62] sm:$0xff]  ;;  %v2884_v0 = vld [vmem:[#allocation2 + $0x50] sm:$0xff]  ;;  %v2444_v2 = vpack.c.bf16 %v2070_v63, %v2069_v62  ;;  %v2022_v9 = vld [vmem:[%s3046_s1 + $0x78] sm:$0xff] }
  0x35   : > { %v2888_v1 = vld [vmem:[#allocation2 + $0x60] sm:$0xff]  ;;  %v2021_v7 = vld [vmem:[%s3046_s1 + $0x70] sm:$0xff]  ;;  %v2082_v19 = vld [vmem:[%s3046_s1 + $0x118] sm:$0xff] }
  0x36   : > { %v2828_v47 = vld [vmem:[#allocation2 + $0x71] sm:$0xff]  ;;  %2316 = vmatmul.mubr.msk.f32.gmra.mrb[2].mxu0 %vm369_vm0, %v2822_v44  ;;  %v689_v6 = vld [vmem:[#allocation2 + $0x2] sm:$0xff]  ;;  %v2412_v11 = vpack.c.bf16 %v2022_v9, %v2021_v7 }
  0x37   : > { %2222 = vmatmul.mubr.msk.f32.gmra.mrb[6].mxu1 %vm369_vm0, %v2828_v47  ;;  %2318 = vmatprep.mubr.msk.f32.mxu0 %vm369_vm0, %v2826_v46  ;;  %v2849_v55 = vld [vmem:[#allocation2 + $0x72] sm:$0xff] }
  0x38   : > { %2232 = vmatprep.mubr.msk.f32.mxu1 %vm369_vm0, %v406_v45  ;;  %2439 = vmatpush3.bf16.msra.mxu0 %v2436_v39  ;;  %v413_v5 = vld [vmem:[#allocation2 + $0x70] sm:$0xff] }
  0x39   : > { %2441 = vmatprep.subr.bf16.mxu0 %v2440_v50  ;;  %v2866_v59 = vld [vmem:[#allocation2 + $0x82] sm:$0xff]  ;;  %v1297_v15 = vld [vmem:[#allocation2 + $0x90] sm:$0xff] }
  0x3a   : > { %2319 = vmatmul.mubr.msk.f32.gmra.mrb[4].mxu0 %vm369_vm0, %v2845_v52  ;;  %v1296_v14 = vld [vmem:[#allocation2 + $0x80] sm:$0xff]  ;;  %v2081_v16 = vld [vmem:[%s3046_s1 + $0x110] sm:$0xff] }
  0x3b   : > { %2233 = vmatmul.mubr.msk.f32.vlgmr.msra.gmra.mrb[0].mxu1 %vm369_vm0, %v2841_v51  ;;  %2321 = vmatprep.mubr.msk.f32.mxu0 %vm369_vm0, %v2849_v55  ;;  %v2452_v17 = vpack.c.bf16 %v2082_v19, %v2081_v16  ;;  %v1447_v20 = vld [vmem:[#allocation2 + $0x91] sm:$0xff] }
  0x3c   : > { %2403 = vmatpush3.bf16.msra.mxu1 %v2770_v21  ;;  %2235 = vmatprep.mubr.msk.f32.mxu1 %vm369_vm0, %v2847_v53 }
  0x3d   : > { %2405 = vmatprep.subr.bf16.mxu1 %v2404_v54 }
  0x3e   : > { %2322 = vmatmul.mubr.msk.f32.gmra.mrb[6].mxu0 %vm369_vm0, %v2866_v59 }
  0x3f   : > { %2236 = vmatmul.mubr.msk.f32.gmra.mrb[2].mxu1 %vm369_vm0, %v2864_v58  ;;  %2332 = vmatprep.mubr.msk.f32.mxu0 %vm369_vm0, %v2847_v53 }
  0x40   : > { %2238 = vmatprep.mubr.msk.f32.mxu1 %vm369_vm0, %v2870_v60  ;;  %2407 = vmatpush3.bf16.msra.mxu1 %v2404_v54 }
  0x41   : > { %2409 = vmatprep.subr.bf16.mxu1 %v2408_v61 }
  0x42   : > { %2333 = vmatmul.mubr.msk.f32.vlgmr.msra.gmra.mrb[0].mxu0 %vm369_vm0, %v2864_v58 }
  0x43   : > { %2239 = vmatmul.mubr.msk.f32.gmra.mrb[4].mxu1 %vm369_vm0, %v2884_v0  ;;  %2443 = vmatpush3.bf16.msra.mxu0 %v2440_v50 }
  0x44   : > { %2241 = vmatprep.mubr.msk.f32.mxu1 %vm369_vm0, %v2888_v1  ;;  %2335 = vmatprep.mubr.msk.f32.mxu0 %vm369_vm0, %v2870_v60 }
  0x45   : > { %2445 = vmatprep.subr.bf16.mxu0 %v2444_v2 }
  0x46   : > { %2336 = vmatmul.mubr.msk.f32.gmra.mrb[2].mxu0 %vm369_vm0, %v2884_v0 }
  0x47   : > { %2242 = vmatmul.mubr.msk.f32.gmra.mrb[6].mxu1 %vm369_vm0, %v413_v5  ;;  %2338 = vmatprep.mubr.msk.f32.mxu0 %vm369_vm0, %v2888_v1 }
  0x48   : > { %2252 = vmatprep.mubr.msk.f32.mxu1 %vm369_vm0, %v689_v6  ;;  %2447 = vmatpush3.bf16.msra.mxu0 %v2444_v2 }
  0x49   : > { %2449 = vmatprep.subr.bf16.mxu0 %v2448_v10 }
  0x4a   : > { %2339 = vmatmul.mubr.msk.f32.gmra.mrb[4].mxu0 %vm369_vm0, %v413_v5 }
  0x4b   : > { %2253 = vmatmul.mubr.msk.f32.vlgmr.msra.gmra.mrb[0].mxu1 %vm369_vm0, %v2781_v28  ;;  %2341 = vmatprep.mubr.msk.f32.mxu0 %vm369_vm0, %v1296_v14 }
  0x4c   : > { %2411 = vmatpush3.bf16.msra.mxu1 %v2408_v61  ;;  %2255 = vmatprep.mubr.msk.f32.mxu1 %vm369_vm0, %v2801_v36 }
  0x4d   : > { %2413 = vmatprep.subr.bf16.mxu1 %v2412_v11 }
  0x4e   : > { %2342 = vmatmul.mubr.msk.f32.gmra.mrb[6].mxu0 %vm369_vm0, %v1297_v15 }
  0x4f   : > { %2256 = vmatmul.mubr.msk.f32.gmra.mrb[2].mxu1 %vm369_vm0, %v2805_v38  ;;  %2352 = vmatprep.mubr.msk.f32.mxu0 %vm369_vm0, %v2756_v12  ;;  %v1446_v12 = vld [vmem:[#allocation2 + $0x81] sm:$0xff] }
  0x50   : > { %2258 = vmatprep.mubr.msk.f32.mxu1 %vm369_vm0, %v2822_v44  ;;  %2415 = vmatpush3.bf16.msra.mxu1 %v2412_v11 }
  0x51   : > { %2456 = vmatprep.subr.bf16.mxu1 %v2606_v8 }
  0x52   : > { %2353 = vmatmul.mubr.msk.f32.vlgmr.msra.gmra.mrb[0].mxu0 %vm369_vm0, %v2774_v26 }
  0x53   : > { %2259 = vmatmul.mubr.msk.f32.gmra.mrb[4].mxu1 %vm369_vm0, %v2826_v46  ;;  %2451 = vmatpush3.bf16.msra.mxu0 %v2448_v10 }
  0x54   : > { %2261 = vmatprep.mubr.msk.f32.mxu1 %vm369_vm0, %v2845_v52  ;;  %2355 = vmatprep.mubr.msk.f32.mxu0 %vm369_vm0, %v2787_v32 }
  0x55   : > { %2453 = vmatprep.subr.bf16.mxu0 %v2452_v17 }
  0x56   : > { %2356 = vmatmul.mubr.msk.f32.gmra.mrb[2].mxu0 %vm369_vm0, %v2803_v37 }
  0x57   : > { %2262 = vmatmul.mubr.msk.f32.gmra.mrb[6].mxu1 %vm369_vm0, %v2849_v55  ;;  %2358 = vmatprep.mubr.msk.f32.mxu0 %vm369_vm0, %v2818_v43 }
  0x58   : > { %2272 = vmatprep.mubr.msk.f32.mxu1 %vm369_vm0, %v2841_v51  ;;  %2455 = vmatpush3.bf16.msra.mxu0 %v2452_v17 }
  0x5a   : > { %2359 = vmatmul.mubr.msk.f32.gmra.mrb[4].mxu0 %vm369_vm0, %v2828_v47 }
  0x5b   : > { %2273 = vmatmul.mubr.msk.f32.vlgmr.msra.gmra.mrb[0].mxu1 %vm369_vm0, %v2847_v53  ;;  %2361 = vmatprep.mubr.msk.f32.mxu0 %vm369_vm0, %v1446_v12 }
  0x5c   : > { %2458 = vmatpush3.bf16.msra.mxu1 %v2606_v8  ;;  %2275 = vmatprep.mubr.msk.f32.mxu1 %vm369_vm0, %v2864_v58  ;;  %v1597_v8 = vld [vmem:[#allocation2 + $0x92] sm:$0xff] }
  0x5d   : > { %2457 = vmatprep.subr.bf16.mxu1 %v2637_v13 }
  0x5e   : > { %2362 = vmatmul.mubr.msk.f32.gmra.mrb[6].mxu0 %vm369_vm0, %v1447_v20 }
  0x5f   : > { %2276 = vmatmul.mubr.msk.f32.gmra.mrb[2].mxu1 %vm369_vm0, %v2870_v60  ;;  %2372 = vmatprep.mubr.msk.f32.mxu0 %vm369_vm0, %v2801_v36 }
  0x60   : > { %2278 = vmatprep.mubr.msk.f32.mxu1 %vm369_vm0, %v2884_v0  ;;  %2459 = vmatpush3.bf16.msra.mxu1 %v2637_v13 }
  0x62   : > { %2373 = vmatmul.mubr.msk.f32.vlgmr.msra.gmra.mrb[0].mxu0 %vm369_vm0, %v2805_v38 }
  0x63   : > { %2279 = vmatmul.mubr.msk.f32.gmra.mrb[4].mxu1 %vm369_vm0, %v2888_v1  ;;  %2375 = vmatprep.mubr.msk.f32.mxu0 %vm369_vm0, %v2822_v44 }
  0x64   : > { %2281 = vmatprep.mubr.msk.f32.mxu1 %vm369_vm0, %v413_v5 }
  0x66   : > { %2376 = vmatmul.mubr.msk.f32.gmra.mrb[2].mxu0 %vm369_vm0, %v2826_v46 }
  0x67   : > { %2282 = vmatmul.mubr.msk.f32.gmra.mrb[6].mxu1 %vm369_vm0, %v1296_v14  ;;  %2378 = vmatprep.mubr.msk.f32.mxu0 %vm369_vm0, %v2845_v52 }
  0x68   : > { %2298 = vmatprep.mubr.msk.f32.mxu1 %vm369_vm0, %v2803_v37 }
  0x6a   : > { %2379 = vmatmul.mubr.msk.f32.gmra.mrb[4].mxu0 %vm369_vm0, %v2849_v55 }
  0x6b   : > { %2299 = vmatmul.mubr.msk.f32.vlgmr.msra.gmra.mrb[4].mxu1 %vm369_vm0, %v2818_v43  ;;  %2381 = vmatprep.mubr.msk.f32.mxu0 %vm369_vm0, %v2866_v59 }
  0x6c   : > { %2301 = vmatprep.mubr.msk.f32.mxu1 %vm369_vm0, %v2828_v47 }
  0x6e   : > { %2382 = vmatmul.mubr.msk.f32.gmra.mrb[6].mxu0 %vm369_vm0, %v1597_v8 }
  0x6f   : > { %2302 = vmatmul.mubr.msk.f32.gmra.mrb[6].mxu1 %vm369_vm0, %v1446_v12 }
 0x12e   : > { %v2274_v13 = vpop.f32.mrb[0].mxu1 }
 0x12f   : > { %v942_v21 = vpop.f32.mrb[1].mxu1 }
 0x132   : > { %v2277_v22 = vpop.f32.mrb[2].mxu1 }
 0x133   : > { %v952_v23 = vpop.f32.mrb[3].mxu1 }
 0x135   : > { %v2374_v24 = vpop.f32.mrb[0].mxu0 }
 0x136   : > { %v2460_v26 = vadd.f32 %v2374_v24, %v2274_v13  ;;  %v1693_v27 = vpop.f32.mrb[1].mxu0 }
 0x137   : > { %v2461_v28 = vadd.f32 %v1693_v27, %v942_v21 }
 0x138   : > { %v1748_v29 = vadd.f32 %v2460_v26, %v2091_v25 }
 0x139   : > { %v1747_v18 = vadd.f32 %v2461_v28, %v2091_v25  ;;  %v2377_v30 = vpop.f32.mrb[2].mxu0 }
 0x13a   : > { %1757 = vst.msk [vmem:[%s3000_s8 + $0x8] sm:$0xff] %vm1755_vm3, %v1748_v29  ;;  %v1765_v31 = vsel %vm1755_vm3, %v1748_v29, 0.0  ;;  %v1788_v32 = vmul.f32 %v1748_v29, %v1748_v29  ;;  %v2462_v33 = vadd.f32 %v2377_v30, %v2277_v22  ;;  %v1703_v34 = vpop.f32.mrb[3].mxu0 }
 0x13b   : > { %1756 = vst.msk [vmem:[%s3000_s8] sm:$0xff] %vm1755_vm3, %v1747_v18  ;;  %v1764_v35 = vsel %vm1755_vm3, %v1747_v18, 0.0  ;;  %v1787_v36 = vmul.f32 %v1747_v18, %v1747_v18  ;;  %v2463_v37 = vadd.f32 %v1703_v34, %v952_v23 }
 0x13c   : > { %v1796_v38 = vsel %vm1755_vm3, %v1788_v32, 0.0  ;;  %v1766_v39 = vadd.f32 %v1765_v31, %v1764_v35  ;;  %v1750_v40 = vadd.f32 %v2462_v33, %v2091_v25 }
 0x13d   : > { %v1795_v41 = vsel %vm1755_vm3, %v1787_v36, 0.0  ;;  %v1749_v42 = vadd.f32 %v2463_v37, %v2091_v25  ;;  %v2380_v44 = vpop.f32.mrb[4].mxu0 }
 0x13e   : > { %v2300_v43 = vpop.f32.mrb[4].mxu1  ;;  %v1797_v45 = vadd.f32 %v1796_v38, %v1795_v41  ;;  %1759 = vst.msk [vmem:[%s3000_s8 + $0x18] sm:$0xff] %vm1755_vm3, %v1750_v40  ;;  %v1790_v46 = vmul.f32 %v1750_v40, %v1750_v40  ;;  %v1713_v49 = vpop.f32.mrb[5].mxu0  ;;  %v1769_v55 = vsel %vm1755_vm3, %v1750_v40, 0.0 }
 0x13f   : > { %v1112_v47 = vpop.f32.mrb[5].mxu1  ;;  %v2464_v48 = vadd.f32 %v2380_v44, %v2300_v43  ;;  %1758 = vst.msk [vmem:[%s3000_s8 + $0x10] sm:$0xff] %vm1755_vm3, %v1749_v42  ;;  %v1767_v50 = vsel %vm1755_vm3, %v1749_v42, 0.0  ;;  %v1789_v51 = vmul.f32 %v1749_v42, %v1749_v42 }
 0x140   : > { %v2465_v52 = vadd.f32 %v1713_v49, %v1112_v47  ;;  %v1768_v53 = vadd.f32 %v1767_v50, %v1766_v39  ;;  %v1800_v60 = vsel %vm1755_vm3, %v1790_v46, 0.0 }
 0x141   : > { %v1752_v54 = vadd.f32 %v2464_v48, %v2091_v25  ;;  %v1798_v56 = vsel %vm1755_vm3, %v1789_v51, 0.0  ;;  %v2383_v59 = vpop.f32.mrb[6].mxu0 }
 0x142   : > { %v1751_v57 = vadd.f32 %v2465_v52, %v2091_v25  ;;  %v2303_v58 = vpop.f32.mrb[6].mxu1  ;;  %v1799_v61 = vadd.f32 %v1798_v56, %v1797_v45  ;;  %v1770_v63 = vadd.f32 %v1769_v55, %v1768_v53  ;;  %v1723_v1 = vpop.f32.mrb[7].mxu0 }
 0x143   : > { %1761 = vst.msk [vmem:[%s3000_s8 + $0x28] sm:$0xff] %vm1755_vm3, %v1752_v54  ;;  %v1792_v62 = vmul.f32 %v1752_v54, %v1752_v54  ;;  %v1122_v0 = vpop.f32.mrb[7].mxu1  ;;  %v2466_v4 = vadd.f32 %v2383_v59, %v2303_v58  ;;  %v1773_v9 = vsel %vm1755_vm3, %v1752_v54, 0.0 }
 0x144   : > { %1760 = vst.msk [vmem:[%s3000_s8 + $0x20] sm:$0xff] %vm1755_vm3, %v1751_v57  ;;  %v1771_v2 = vsel %vm1755_vm3, %v1751_v57, 0.0  ;;  %v1791_v3 = vmul.f32 %v1751_v57, %v1751_v57  ;;  %v2467_v5 = vadd.f32 %v1723_v1, %v1122_v0  ;;  %v1801_v7 = vadd.f32 %v1800_v60, %v1799_v61 }
 0x145   : > { %v1772_v6 = vadd.f32 %v1771_v2, %v1770_v63  ;;  %v1754_v11 = vadd.f32 %v2466_v4, %v2091_v25  ;;  %v1804_v19 = vsel %vm1755_vm3, %v1792_v62, 0.0 }
 0x146   : > { %v1802_v10 = vsel %vm1755_vm3, %v1791_v3, 0.0  ;;  %v1753_v14 = vadd.f32 %v2467_v5, %v2091_v25 }
 0x147   : > { %v1803_v15 = vadd.f32 %v1802_v10, %v1801_v7  ;;  %v1774_v16 = vadd.f32 %v1773_v9, %v1772_v6  ;;  %1763 = vst.msk [vmem:[%s3000_s8 + $0x38] sm:$0xff] %vm1755_vm3, %v1754_v11  ;;  %v1794_v17 = vmul.f32 %v1754_v11, %v1754_v11  ;;  %v1777_v21 = vsel %vm1755_vm3, %v1754_v11, 0.0 }
 0x148   : > { %1762 = vst.msk [vmem:[%s3000_s8 + $0x30] sm:$0xff] %vm1755_vm3, %v1753_v14  ;;  %v1775_v12 = vsel %vm1755_vm3, %v1753_v14, 0.0  ;;  %v1793_v20 = vmul.f32 %v1753_v14, %v1753_v14 }
 0x149   : > { %v1776_v8 = vadd.f32 %v1775_v12, %v1774_v16  ;;  %v1805_v13 = vadd.f32 %v1804_v19, %v1803_v15  ;;  %v1808_v25 = vsel %vm1755_vm3, %v1794_v17, 0.0 }
 0x14a   : > { %v1806_v22 = vsel %vm1755_vm3, %v1793_v20, 0.0 }
 0x14b   : > { %v1778_v23 = vadd.f32 %v1777_v21, %v1776_v8  ;;  %v1807_v24 = vadd.f32 %v1806_v22, %v1805_v13 }
 0x14d   : > { %v1779_v26 = vrot.slane %v1778_v23, 4  ;;  %v1809_v27 = vadd.f32 %v1808_v25, %v1807_v24 }
 0x14f   : > { %v1780_v28 = vadd.f32 %v1779_v26, %v1778_v23  ;;  %v1810_v29 = vrot.slane %v1809_v27, 4 }
 0x151   : > { %v1781_v18 = vrot.slane %v1780_v28, 2  ;;  %v1811_v30 = vadd.f32 %v1810_v29, %v1809_v27 }
 0x153   : > { %v1782_v31 = vadd.f32 %v1781_v18, %v1780_v28  ;;  %v1812_v32 = vrot.slane %v1811_v30, 2 }
 0x155   : > { %v1783_v33 = vrot.slane %v1782_v31, 1  ;;  %v1813_v34 = vadd.f32 %v1812_v32, %v1811_v30 }
 0x157   : > { %v1784_v35 = vadd.f32 %v1783_v33, %v1782_v31  ;;  %v1814_v36 = vrot.slane %v1813_v34, 1 }
 0x159   : > { %1786 = vst.msk [vmem:[%s238_s11] sm:$0x1] %vm1785_vm4, %v1784_v35  ;;  %v1815_v37 = vadd.f32 %v1814_v36, %v1813_v34 }
 0x15b   : > { %1816 = vst.msk [vmem:[%s241_s14] sm:$0x1] %vm1785_vm4, %v1815_v37 }
 0x15c PF: > { %s16_s18 = sadd.s32 1, %s2539_s18  }
 0x15d   : > { %p13_p4 = scmp.ge.s32.totalorder %s16_s18, 4  }
 0x15f   :  { %15 = sbr.rel (!%p13_p4) target bundleno = 1 (0x1), region = 104 }

// kernel: down3d_forward.3
= control target key start
LH: loop header
LB: loop body
LE: loop exit
PB: predicated region body
PF: predicated region fallthrough
CT: control target
= control target key end

     0   :  { %s2751_s24 = smov 0   ;;  %s3272_s0 = inlined_call_operand.vmem [shape: f32[2,64,64], index: 0, kind: input, shape index: {}]   ;;  %s3273_s1 = inlined_call_operand.vmem [shape: f32[1,64], index: 1, kind: input, shape index: {}]   ;;  %s3274_s2 = inlined_call_operand.vmem [shape: f32[1,64], index: 2, kind: input, shape index: {}]   ;;  %s3275_s3 = inlined_call_operand.vmem [shape: f32[9,64,64], index: 3, kind: input, shape index: {}]   ;;  %s3276_s4 = inlined_call_operand.vmem [shape: f32[1,64], index: 4, kind: input, shape index: {}]   ;;  %s3277_s5 = inlined_call_operand.vmem [shape: f32[2,64,64], index: 5, kind: output, shape index: {0}]   ;;  %s3278_s6 = inlined_call_operand.vmem [shape: f32[2,1,64], index: 6, kind: output, shape index: {1}]   ;;  %s3279_s7 = inlined_call_operand.vmem [shape: f32[2,1,64], index: 7, kind: output, shape index: {2}]  }
   0x1 LB: > { %s1929_s25 = sadd.s32 4294967295, %s2708_s24   ;;  %p1933_p0 = scmp.ge.s32.totalorder %s2708_s24, 1  ;;  %s2708_s24 = sphi %s2751_s24, %s18_s24  }
   0x2   : > { %p242_p1 = scmp.lt.s32.totalorder %s2708_s24, 3 }
   0x4   : > { %p243_p2 = pnand %p1933_p0, %p242_p1 }
   0x5   : > { %v1940_v0 = vld [vmem:[%s3275_s3 + $0x40] sm:$0xff] (!%p243_p2)  ;;  %v1941_v1 = vld [vmem:[%s3275_s3 + $0x48] sm:$0xff] (!%p243_p2)  ;;  %vm342_vm0 = vcmask (!%p243_p2), 523264   ;;  %vm344_vm1 = vcmask (!%p243_p2), 517120   ;;  %v1942_v5 = vld [vmem:[%s3275_s3 + $0x50] sm:$0xff] (!%p243_p2)  ;;  %v2710_v7 = vmov (!%p243_p2), 0.0  }
   0x6   : > { %246 = sbr.rel (%p243_p2) target bundleno = 345 (0x159), region = 40  ;;  %v1996_v2 = vld [vmem:[%s3275_s3 + $0x100] sm:$0xff] (!%p243_p2)  ;;  %v2477_v3 = vpack.c.bf16 (!%p243_p2), %v1941_v1, %v1940_v0  ;;  %v1997_v4 = vld [vmem:[%s3275_s3 + $0x108] sm:$0xff] (!%p243_p2)  ;;  %v1943_v6 = vld [vmem:[%s3275_s3 + $0x58] sm:$0xff] (!%p243_p2)  ;;  %343 = vst.msk [vmem:[#allocation2] sm:$0xff] (!%p243_p2), %vm342_vm0, %v2710_v7  ;;  %vm349_vm2 = vcmask (!%p243_p2), 516096  }
   0x7   : > { %345 = vst.msk [vmem:[#allocation2 + $0x8] sm:$0x3] (!%p243_p2), %vm344_vm1, %v2710_v7  ;;  %348 = vst.msk [vmem:[#allocation2 + $0x98] sm:$0x3] (!%p243_p2), %vm344_vm1, %v2710_v7  ;;  %p2781_p3 = scmp.lt.s32.totalorder (!%p243_p2), %s1929_s25, 1  ;;  %v2541_v8 = vpack.c.bf16 (!%p243_p2), %v1997_v4, %v1996_v2  ;;  %v2481_v9 = vpack.c.bf16 (!%p243_p2), %v1943_v6, %v1942_v5  ;;  %v1998_v10 = vld [vmem:[%s3275_s3 + $0x110] sm:$0xff] (!%p243_p2) }
   0x8   : > { %347 = vst.msk [vmem:[#allocation2 + $0x90] sm:$0xff] (!%p243_p2), %vm342_vm0, %v2710_v7  ;;  %v1999_v11 = vld [vmem:[%s3275_s3 + $0x118] sm:$0xff] (!%p243_p2)  ;;  %v1944_v12 = vld [vmem:[%s3275_s3 + $0x60] sm:$0xff] (!%p243_p2)  ;;  %2478 = vmatprep.subr.bf16.mxu1 (!%p243_p2), %v2477_v3  ;;  %v1945_v14 = vld [vmem:[%s3275_s3 + $0x68] sm:$0xff] (!%p243_p2) }
   0x9   : > { %360 = vst.msk [vmem:[#allocation2 + $0x9] sm:$0x1] (!%p243_p2), %vm349_vm2, %v2710_v7  ;;  %350 = vst.msk [vmem:[#allocation2] sm:$0x1] (!%p243_p2), %vm349_vm2, %v2710_v7  ;;  %v2545_v13 = vpack.c.bf16 (!%p243_p2), %v1999_v11, %v1998_v10  ;;  %v2000_v15 = vld [vmem:[%s3275_s3 + $0x120] sm:$0xff] (!%p243_p2)  ;;  %v2001_v16 = vld [vmem:[%s3275_s3 + $0x128] sm:$0xff] (!%p243_p2)  ;;  %2542 = vmatprep.subr.bf16.mxu0 (!%p243_p2), %v2541_v8  ;;  %2480 = vmatpush3.bf16.msra.mxu1 (!%p243_p2), %v2477_v3  ;;  %v2485_v17 = vpack.c.bf16 (!%p243_p2), %v1945_v14, %v1944_v12 }
   0xa   : > { %351 = vst.msk [vmem:[#allocation2 + $0x10] sm:$0x1] (!%p243_p2), %vm349_vm2, %v2710_v7  ;;  %352 = vst.msk [vmem:[#allocation2 + $0x20] sm:$0x1] (!%p243_p2), %vm349_vm2, %v2710_v7  ;;  %2544 = vmatpush3.bf16.msra.mxu0 (!%p243_p2), %v2541_v8  ;;  %2482 = vmatprep.subr.bf16.mxu1 (!%p243_p2), %v2481_v9  ;;  %v1946_v18 = vld [vmem:[%s3275_s3 + $0x70] sm:$0xff] (!%p243_p2)  ;;  %v2549_v20 = vpack.c.bf16 (!%p243_p2), %v2001_v16, %v2000_v15  ;;  %v1947_v21 = vld [vmem:[%s3275_s3 + $0x78] sm:$0xff] (!%p243_p2) }
   0xb   : > { %353 = vst.msk [vmem:[#allocation2 + $0x30] sm:$0x1] (!%p243_p2), %vm349_vm2, %v2710_v7  ;;  %354 = vst.msk [vmem:[#allocation2 + $0x40] sm:$0x1] (!%p243_p2), %vm349_vm2, %v2710_v7  ;;  %v1938_v19 = vld [vmem:[%s3273_s1] ss:$0 sm:$0xff] (!%p243_p2)  ;;  %2546 = vmatprep.subr.bf16.mxu0 (!%p243_p2), %v2545_v13  ;;  %v2489_v31 = vpack.c.bf16 (!%p243_p2), %v1947_v21, %v1946_v18 }
   0xc   : > { %355 = vst.msk [vmem:[#allocation2 + $0x50] sm:$0x1] (!%p243_p2), %vm349_vm2, %v2710_v7  ;;  %356 = vst.msk [vmem:[#allocation2 + $0x60] sm:$0x1] (!%p243_p2), %vm349_vm2, %v2710_v7  ;;  %v2002_v22 = vld [vmem:[%s3275_s3 + $0x130] sm:$0xff] (!%p243_p2)  ;;  %v2003_v23 = vld [vmem:[%s3275_s3 + $0x138] sm:$0xff] (!%p243_p2) }
   0xd   : > { %357 = vst.msk [vmem:[#allocation2 + $0x70] sm:$0x1] %vm349_vm2, %v2710_v7  ;;  %358 = vst.msk [vmem:[#allocation2 + $0x80] sm:$0x1] %vm349_vm2, %v2710_v7  ;;  %s3282_s25 = smov (!%p2781_p3, %s1929_s25), 1  ;;  %2484 = vmatpush3.bf16.msra.mxu1 %v2481_v9  ;;  %v387_v32 = vld [vmem:[%s3275_s3] sm:$0xff]  ;;  %v2553_v35 = vpack.c.bf16 %v2003_v23, %v2002_v22 }
   0xe   : > { %361 = vst.msk [vmem:[#allocation2 + $0x19] sm:$0x1] %vm349_vm2, %v2710_v7  ;;  %362 = vst.msk [vmem:[#allocation2 + $0x29] sm:$0x1] %vm349_vm2, %v2710_v7  ;;  %s2079_s9 = sshll.u32 %s3282_s25, 6  ;;  %v395_v27 = vld [vmem:[#allocation2 + $0x1] sm:$0xff]  ;;  %2548 = vmatpush3.bf16.msra.mxu0 %v2545_v13  ;;  %2486 = vmatprep.subr.bf16.mxu1 %v2485_v17  ;;  %s292_s21 = scalar_lea.vmem %s3278_s6, %s3282_s25 }
   0xf   : > { %363 = vst.msk [vmem:[#allocation2 + $0x39] sm:$0x1] %vm349_vm2, %v2710_v7  ;;  %364 = vst.msk [vmem:[#allocation2 + $0x49] sm:$0x1] %vm349_vm2, %v2710_v7  ;;  %s2850_s20 = scalar_lea.vmem %s3272_s0, %s2079_s9  ;;  %v1939_v25 = vld [vmem:[%s3274_s2] ss:$0 sm:$0xff]  ;;  %2550 = vmatprep.subr.bf16.mxu0 %v2549_v20  ;;  %2241 = vmatprep.mubr.msk.f32.mxu1 %vm342_vm0, %v395_v27  ;;  %s3225_s19 = scalar_lea.vmem %s3277_s5, %s2079_s9 }
  0x10   : > { %365 = vst.msk [vmem:[#allocation2 + $0x59] sm:$0x1] %vm349_vm2, %v2710_v7  ;;  %366 = vst.msk [vmem:[#allocation2 + $0x69] sm:$0x1] %vm349_vm2, %v2710_v7  ;;  %v296_v24 = vld [vmem:[%s2850_s20] sm:$0xff]  ;;  %v297_v26 = vld [vmem:[%s2850_s20 + $0x8] sm:$0xff]  ;;  %s295_s26 = scalar_lea.vmem %s3279_s7, %s3282_s25 }
  0x11   : > { %367 = vst.msk [vmem:[#allocation2 + $0x79] sm:$0x1] %vm349_vm2, %v2710_v7  ;;  %368 = vst.msk [vmem:[#allocation2 + $0x89] sm:$0x1] %vm349_vm2, %v2710_v7  ;;  %v311_v28 = vmul.f32 %v1938_v19, %v296_v24  ;;  %v312_v29 = vmul.f32 %v1938_v19, %v297_v26  ;;  %v298_v30 = vld [vmem:[%s2850_s20 + $0x10] sm:$0xff]  ;;  %v388_v33 = vld [vmem:[%s3275_s3 + $0x8] sm:$0xff]  ;;  %2488 = vmatpush3.bf16.msra.mxu1 %v2485_v17 }
  0x12   : > { %369 = vst.msk [vmem:[#allocation2 + $0x99] sm:$0x1] %vm349_vm2, %v2710_v7  ;;  %359 = vst.msk [vmem:[#allocation2 + $0x90] sm:$0x1] %vm349_vm2, %v2710_v7  ;;  %v313_v34 = vmul.f32 %v1938_v19, %v298_v30  ;;  %v299_v38 = vld [vmem:[%s2850_s20 + $0x18] sm:$0xff]  ;;  %v300_v39 = vld [vmem:[%s2850_s20 + $0x20] sm:$0xff]  ;;  %v2493_v46 = vpack.c.bf16 %v388_v33, %v387_v32  ;;  %2552 = vmatpush3.bf16.msra.mxu0 %v2549_v20  ;;  %2490 = vmatprep.subr.bf16.mxu1 %v2489_v31 }
  0x13   : > { %v326_v36 = vadd.f32 %v1939_v25, %v311_v28  ;;  %v327_v37 = vadd.f32 %v1939_v25, %v312_v29  ;;  %v2012_v40 = vld [vmem:[%s3275_s3 + $0x140] sm:$0xff]  ;;  %v2013_v41 = vld [vmem:[%s3275_s3 + $0x148] sm:$0xff]  ;;  %v314_v43 = vmul.f32 %v1938_v19, %v299_v38  ;;  %v315_v44 = vmul.f32 %v1938_v19, %v300_v39  ;;  %v302_v49 = vld [vmem:[%s2850_s20 + $0x30] sm:$0xff]  ;;  %2554 = vmatprep.subr.bf16.mxu0 %v2553_v35 }
  0x14   : > { %v328_v42 = vadd.f32 %v1939_v25, %v313_v34  ;;  %v301_v48 = vld [vmem:[%s2850_s20 + $0x28] sm:$0xff]  ;;  %v2557_v54 = vpack.c.bf16 %v2013_v41, %v2012_v40  ;;  %v317_v55 = vmul.f32 %v1938_v19, %v302_v49  ;;  %v303_v56 = vld [vmem:[%s2850_s20 + $0x38] sm:$0xff]  ;;  %v389_v0 = vld [vmem:[%s3275_s3 + $0x10] sm:$0xff] }
  0x15   : > { %v334_v45 = vmax.f32 %v326_v36, 0.0  ;;  %v335_v47 = vmax.f32 %v327_v37, 0.0  ;;  %v329_v51 = vadd.f32 %v1939_v25, %v314_v43  ;;  %v330_v52 = vadd.f32 %v1939_v25, %v315_v44  ;;  %2492 = vmatpush3.bf16.msra.mxu1 %v2489_v31  ;;  %v390_v1 = vld [vmem:[%s3275_s3 + $0x18] sm:$0xff]  ;;  %v2014_v3 = vld [vmem:[%s3275_s3 + $0x150] sm:$0xff]  ;;  %v391_v11 = vld [vmem:[%s3275_s3 + $0x20] sm:$0xff] }
  0x16   : > { %v336_v50 = vmax.f32 %v328_v42, 0.0  ;;  %v316_v53 = vmul.f32 %v1938_v19, %v301_v48  ;;  %v318_v60 = vmul.f32 %v1938_v19, %v303_v56  ;;  %v332_v61 = vadd.f32 %v1939_v25, %v317_v55  ;;  %2556 = vmatpush3.bf16.msra.mxu0 %v2553_v35  ;;  %2494 = vmatprep.subr.bf16.mxu1 %v2493_v46  ;;  %v2015_v4 = vld [vmem:[%s3275_s3 + $0x158] sm:$0xff]  ;;  %v392_v12 = vld [vmem:[%s3275_s3 + $0x28] sm:$0xff]  ;;  %v2016_v13 = vld [vmem:[%s3275_s3 + $0x160] sm:$0xff] }
  0x17   : > { %371 = vst.msk [vmem:[#allocation2 + $0x11] sm:$0xff] %vm342_vm0, %v334_v45  ;;  %372 = vst.msk [vmem:[#allocation2 + $0x21] sm:$0xff] %vm342_vm0, %v335_v47  ;;  %v337_v57 = vmax.f32 %v329_v51, 0.0  ;;  %v338_v58 = vmax.f32 %v330_v52, 0.0  ;;  %2558 = vmatprep.subr.bf16.mxu0 %v2557_v54  ;;  %v2497_v8 = vpack.c.bf16 %v390_v1, %v389_v0  ;;  %v2561_v10 = vpack.c.bf16 %v2015_v4, %v2014_v3  ;;  %v2017_v14 = vld [vmem:[%s3275_s3 + $0x168] sm:$0xff]  ;;  %v393_v19 = vld [vmem:[%s3275_s3 + $0x30] sm:$0xff] }
  0x18   : > { %373 = vst.msk [vmem:[#allocation2 + $0x31] sm:$0xff] %vm342_vm0, %v336_v50  ;;  %v331_v59 = vadd.f32 %v1939_v25, %v316_v53  ;;  %v333_v63 = vadd.f32 %v1939_v25, %v318_v60  ;;  %v340_v2 = vmax.f32 %v332_v61, 0.0  ;;  %v2501_v16 = vpack.c.bf16 %v392_v12, %v391_v11  ;;  %v394_v20 = vld [vmem:[%s3275_s3 + $0x38] sm:$0xff]  ;;  %v2018_v21 = vld [vmem:[%s3275_s3 + $0x170] sm:$0xff]  ;;  %v1964_v27 = vld [vmem:[%s3275_s3 + $0x80] sm:$0xff] }
  0x19   : > { %374 = vst.msk [vmem:[#allocation2 + $0x41] sm:$0xff] %vm342_vm0, %v337_v57  ;;  %375 = vst.msk [vmem:[#allocation2 + $0x51] sm:$0xff] %vm342_vm0, %v338_v58  ;;  %v2565_v18 = vpack.c.bf16 %v2017_v14, %v2016_v13  ;;  %v2019_v22 = vld [vmem:[%s3275_s3 + $0x178] sm:$0xff]  ;;  %v2505_v24 = vpack.c.bf16 %v394_v20, %v393_v19  ;;  %v1965_v28 = vld [vmem:[%s3275_s3 + $0x88] sm:$0xff] }
  0x1a   : > { %v339_v62 = vmax.f32 %v331_v59, 0.0  ;;  %v341_v5 = vmax.f32 %v333_v63, 0.0  ;;  %377 = vst.msk [vmem:[#allocation2 + $0x71] sm:$0xff] %vm342_vm0, %v340_v2  ;;  %v2569_v26 = vpack.c.bf16 %v2019_v22, %v2018_v21  ;;  %v2028_v29 = vld [vmem:[%s3275_s3 + $0x180] sm:$0xff]  ;;  %v2029_v30 = vld [vmem:[%s3275_s3 + $0x188] sm:$0xff]  ;;  %v2509_v33 = vpack.c.bf16 %v1965_v28, %v1964_v27  ;;  %v1966_v36 = vld [vmem:[%s3275_s3 + $0x90] sm:$0xff] }
  0x1b   : > { %v379_v32 = vld [vmem:[#allocation2] sm:$0xff]  ;;  %v2573_v35 = vpack.c.bf16 %v2029_v30, %v2028_v29  ;;  %v1967_v37 = vld [vmem:[%s3275_s3 + $0x98] sm:$0xff]  ;;  %v2030_v39 = vld [vmem:[%s3275_s3 + $0x190] sm:$0xff] }
  0x1c   : > { %376 = vst.msk [vmem:[#allocation2 + $0x61] sm:$0xff] %vm342_vm0, %v339_v62  ;;  %378 = vst.msk [vmem:[#allocation2 + $0x81] sm:$0xff] %vm342_vm0, %v341_v5  ;;  %v2031_v40 = vld [vmem:[%s3275_s3 + $0x198] sm:$0xff]  ;;  %v2513_v43 = vpack.c.bf16 %v1967_v37, %v1966_v36  ;;  %v1969_v47 = vld [vmem:[%s3275_s3 + $0xa8] sm:$0xff] }
  0x1d   : > { %v2577_v45 = vpack.c.bf16 %v2031_v40, %v2030_v39  ;;  %v2032_v49 = vld [vmem:[%s3275_s3 + $0x1a0] sm:$0xff]  ;;  %v2033_v50 = vld [vmem:[%s3275_s3 + $0x1a8] sm:$0xff]  ;;  %v1970_v56 = vld [vmem:[%s3275_s3 + $0xb0] sm:$0xff] }
  0x1e   : > { %v396_v6 = vld [vmem:[#allocation2 + $0x11] sm:$0xff]  ;;  %v2895_v7 = vld [vmem:[#allocation2 + $0x21] sm:$0xff]  ;;  %v2581_v55 = vpack.c.bf16 %v2033_v50, %v2032_v49 }
  0x1f   : > { %2242 = vmatmul.mubr.msk.f32.vlgmr.msra.gmra.mrb[0].mxu1 %vm342_vm0, %v396_v6  ;;  %2353 = vmatprep.mubr.msk.f32.mxu0 %vm342_vm0, %v396_v6  ;;  %v2900_v9 = vld [vmem:[#allocation2 + $0x31] sm:$0xff]  ;;  %v2991_v41 = vld [vmem:[#allocation2 + $0x22] sm:$0xff] }
  0x20   : > { %2496 = vmatpush3.bf16.msra.mxu1 %v2493_v46  ;;  %2354 = vmatmul.mubr.msk.f32.vlgmr.msra.gmra.mrb[0].mxu0 %vm342_vm0, %v2895_v7  ;;  %v2918_v15 = vld [vmem:[#allocation2 + $0x41] sm:$0xff]  ;;  %v2924_v17 = vld [vmem:[#allocation2 + $0x51] sm:$0xff] }
  0x21   : > { %2560 = vmatpush3.bf16.msra.mxu0 %v2557_v54  ;;  %2244 = vmatprep.mubr.msk.f32.mxu1 %vm342_vm0, %v2895_v7  ;;  %v2948_v25 = vld [vmem:[#allocation2 + $0x71] sm:$0xff]  ;;  %v2995_v42 = vld [vmem:[#allocation2 + $0x20] sm:$0xff]  ;;  %v1981_v3 = vld [vmem:[%s3275_s3 + $0xc8] sm:$0xff] }
  0x22   : > { %2498 = vmatprep.subr.bf16.mxu1 %v2497_v8  ;;  %2356 = vmatprep.mubr.msk.f32.mxu0 %vm342_vm0, %v2900_v9  ;;  %v2972_v34 = vld [vmem:[#allocation2 + $0x12] sm:$0xff]  ;;  %v1968_v46 = vld [vmem:[%s3275_s3 + $0xa0] sm:$0xff]  ;;  %v2045_v6 = vld [vmem:[%s3275_s3 + $0x1c8] sm:$0xff] }
  0x23   : > { %2245 = vmatmul.mubr.msk.f32.gmra.mrb[2].mxu1 %vm342_vm0, %v2900_v9  ;;  %2562 = vmatprep.subr.bf16.mxu0 %v2561_v10  ;;  %v2942_v23 = vld [vmem:[#allocation2 + $0x61] sm:$0xff]  ;;  %v2982_v38 = vld [vmem:[#allocation2 + $0x10] sm:$0xff]  ;;  %v2517_v53 = vpack.c.bf16 %v1969_v47, %v1968_v46  ;;  %v1971_v57 = vld [vmem:[%s3275_s3 + $0xb8] sm:$0xff] }
  0x24   : > { %2500 = vmatpush3.bf16.msra.mxu1 %v2497_v8  ;;  %2357 = vmatmul.mubr.msk.f32.gmra.mrb[2].mxu0 %vm342_vm0, %v2918_v15  ;;  %v2966_v31 = vld [vmem:[#allocation2 + $0x81] sm:$0xff]  ;;  %v2999_v44 = vld [vmem:[#allocation2 + $0x32] sm:$0xff]  ;;  %v2521_v63 = vpack.c.bf16 %v1971_v57, %v1970_v56 }
  0x25   : > { %2564 = vmatpush3.bf16.msra.mxu0 %v2561_v10  ;;  %2247 = vmatprep.mubr.msk.f32.mxu1 %vm342_vm0, %v2918_v15  ;;  %v3009_v48 = vld [vmem:[#allocation2 + $0x30] sm:$0xff]  ;;  %v3019_v51 = vld [vmem:[#allocation2 + $0x42] sm:$0xff]  ;;  %v2035_v60 = vld [vmem:[%s3275_s3 + $0x1b8] sm:$0xff] }
  0x26   : > { %2502 = vmatprep.subr.bf16.mxu1 %v2501_v16  ;;  %2359 = vmatprep.mubr.msk.f32.mxu0 %vm342_vm0, %v2924_v17  ;;  %v3023_v52 = vld [vmem:[#allocation2 + $0x40] sm:$0xff]  ;;  %v3027_v54 = vld [vmem:[#allocation2 + $0x52] sm:$0xff]  ;;  %v1985_v22 = vld [vmem:[%s3275_s3 + $0xe8] sm:$0xff] }
  0x27   : > { %2248 = vmatmul.mubr.msk.f32.gmra.mrb[4].mxu1 %vm342_vm0, %v2924_v17  ;;  %2566 = vmatprep.subr.bf16.mxu0 %v2565_v18  ;;  %v3037_v58 = vld [vmem:[#allocation2 + $0x50] sm:$0xff]  ;;  %v3047_v61 = vld [vmem:[#allocation2 + $0x62] sm:$0xff]  ;;  %v1983_v14 = vld [vmem:[%s3275_s3 + $0xd8] sm:$0xff] }
  0x28   : > { %2504 = vmatpush3.bf16.msra.mxu1 %v2501_v16  ;;  %2360 = vmatmul.mubr.msk.f32.gmra.mrb[4].mxu0 %vm342_vm0, %v2942_v23  ;;  %v2034_v59 = vld [vmem:[%s3275_s3 + $0x1b0] sm:$0xff]  ;;  %v3051_v62 = vld [vmem:[#allocation2 + $0x60] sm:$0xff]  ;;  %v1987_v30 = vld [vmem:[%s3275_s3 + $0xf8] sm:$0xff] }
  0x29   : > { %2568 = vmatpush3.bf16.msra.mxu0 %v2565_v18  ;;  %2250 = vmatprep.mubr.msk.f32.mxu1 %vm342_vm0, %v2942_v23  ;;  %v3055_v0 = vld [vmem:[#allocation2 + $0x72] sm:$0xff]  ;;  %v2585_v1 = vpack.c.bf16 %v2035_v60, %v2034_v59  ;;  %v1980_v2 = vld [vmem:[%s3275_s3 + $0xc0] sm:$0xff]  ;;  %v2061_v39 = vld [vmem:[%s3275_s3 + $0x208] sm:$0xff] }
  0x2a   : > { %2506 = vmatprep.subr.bf16.mxu1 %v2505_v24  ;;  %2362 = vmatprep.mubr.msk.f32.mxu0 %vm342_vm0, %v2948_v25  ;;  %v3065_v4 = vld [vmem:[#allocation2 + $0x70] sm:$0xff]  ;;  %v2044_v5 = vld [vmem:[%s3275_s3 + $0x1c0] sm:$0xff]  ;;  %v2525_v11 = vpack.c.bf16 %v1981_v3, %v1980_v2  ;;  %v2047_v18 = vld [vmem:[%s3275_s3 + $0x1d8] sm:$0xff] }
  0x2b   : > { %2251 = vmatmul.mubr.msk.f32.gmra.mrb[6].mxu1 %vm342_vm0, %v2948_v25  ;;  %2570 = vmatprep.subr.bf16.mxu0 %v2569_v26  ;;  %v3075_v8 = vld [vmem:[#allocation2 + $0x82] sm:$0xff]  ;;  %v2589_v12 = vpack.c.bf16 %v2045_v6, %v2044_v5  ;;  %v1982_v13 = vld [vmem:[%s3275_s3 + $0xd0] sm:$0xff]  ;;  %v2063_v46 = vld [vmem:[%s3275_s3 + $0x218] sm:$0xff] }
  0x2c   : > { %2508 = vmatpush3.bf16.msra.mxu1 %v2505_v24  ;;  %2363 = vmatmul.mubr.msk.f32.gmra.mrb[6].mxu0 %vm342_vm0, %v2966_v31  ;;  %v670_v10 = vld [vmem:[#allocation2 + $0x2] sm:$0xff]  ;;  %v2046_v16 = vld [vmem:[%s3275_s3 + $0x1d0] sm:$0xff]  ;;  %v2529_v19 = vpack.c.bf16 %v1983_v14, %v1982_v13 }
  0x2d   : > { %2572 = vmatpush3.bf16.msra.mxu0 %v2569_v26  ;;  %2269 = vmatprep.mubr.msk.f32.mxu1 %vm342_vm0, %v379_v32  ;;  %v2593_v20 = vpack.c.bf16 %v2047_v18, %v2046_v16  ;;  %v1984_v21 = vld [vmem:[%s3275_s3 + $0xe0] sm:$0xff]  ;;  %v2049_v26 = vld [vmem:[%s3275_s3 + $0x1e8] sm:$0xff]  ;;  %v1986_v29 = vld [vmem:[%s3275_s3 + $0xf0] sm:$0xff] }
  0x2e   : > { %2510 = vmatprep.subr.bf16.mxu1 %v2509_v33  ;;  %2381 = vmatprep.mubr.msk.f32.mxu0 %vm342_vm0, %v2972_v34  ;;  %v2048_v24 = vld [vmem:[%s3275_s3 + $0x1e0] sm:$0xff]  ;;  %v2533_v27 = vpack.c.bf16 %v1985_v22, %v1984_v21  ;;  %v2050_v32 = vld [vmem:[%s3275_s3 + $0x1f0] sm:$0xff]  ;;  %v2065_v50 = vld [vmem:[%s3275_s3 + $0x228] sm:$0xff] }
  0x2f   : > { %2270 = vmatmul.mubr.msk.f32.vlgmr.msra.gmra.mrb[0].mxu1 %vm342_vm0, %v2982_v38  ;;  %2574 = vmatprep.subr.bf16.mxu0 %v2573_v35  ;;  %v2597_v28 = vpack.c.bf16 %v2049_v26, %v2048_v24  ;;  %v2060_v37 = vld [vmem:[%s3275_s3 + $0x200] sm:$0xff]  ;;  %v1294_v40 = vld [vmem:[#allocation2 + $0x90] sm:$0xff] }
  0x30   : > { %2512 = vmatpush3.bf16.msra.mxu1 %v2509_v33  ;;  %2382 = vmatmul.mubr.msk.f32.vlgmr.msra.gmra.mrb[0].mxu0 %vm342_vm0, %v2991_v41  ;;  %v2051_v33 = vld [vmem:[%s3275_s3 + $0x1f8] sm:$0xff]  ;;  %v2064_v49 = vld [vmem:[%s3275_s3 + $0x220] sm:$0xff] }
  0x31   : > { %2576 = vmatpush3.bf16.msra.mxu0 %v2573_v35  ;;  %2272 = vmatprep.mubr.msk.f32.mxu1 %vm342_vm0, %v2995_v42  ;;  %v1293_v35 = vld [vmem:[#allocation2 + $0x80] sm:$0xff]  ;;  %v2601_v36 = vpack.c.bf16 %v2051_v33, %v2050_v32 }
  0x32   : > { %2514 = vmatprep.subr.bf16.mxu1 %v2513_v43  ;;  %2384 = vmatprep.mubr.msk.f32.mxu0 %vm342_vm0, %v2999_v44 }
  0x33   : > { %2273 = vmatmul.mubr.msk.f32.gmra.mrb[2].mxu1 %vm342_vm0, %v3009_v48  ;;  %2578 = vmatprep.subr.bf16.mxu0 %v2577_v45 }
  0x34   : > { %2516 = vmatpush3.bf16.msra.mxu1 %v2513_v43  ;;  %2385 = vmatmul.mubr.msk.f32.gmra.mrb[2].mxu0 %vm342_vm0, %v3019_v51  ;;  %v2605_v43 = vpack.c.bf16 %v2061_v39, %v2060_v37 }
  0x35   : > { %2580 = vmatpush3.bf16.msra.mxu0 %v2577_v45  ;;  %2275 = vmatprep.mubr.msk.f32.mxu1 %vm342_vm0, %v3023_v52  ;;  %v2062_v45 = vld [vmem:[%s3275_s3 + $0x210] sm:$0xff] }
  0x36   : > { %2518 = vmatprep.subr.bf16.mxu1 %v2517_v53  ;;  %2387 = vmatprep.mubr.msk.f32.mxu0 %vm342_vm0, %v3027_v54  ;;  %v2609_v47 = vpack.c.bf16 %v2063_v46, %v2062_v45 }
  0x37   : > { %2276 = vmatmul.mubr.msk.f32.gmra.mrb[4].mxu1 %vm342_vm0, %v3037_v58  ;;  %2582 = vmatprep.subr.bf16.mxu0 %v2581_v55 }
  0x38   : > { %2520 = vmatpush3.bf16.msra.mxu1 %v2517_v53  ;;  %2388 = vmatmul.mubr.msk.f32.gmra.mrb[4].mxu0 %vm342_vm0, %v3047_v61 }
  0x39   : > { %2584 = vmatpush3.bf16.msra.mxu0 %v2581_v55  ;;  %2278 = vmatprep.mubr.msk.f32.mxu1 %vm342_vm0, %v3051_v62 }
  0x3a   : > { %2522 = vmatprep.subr.bf16.mxu1 %v2521_v63  ;;  %2390 = vmatprep.mubr.msk.f32.mxu0 %vm342_vm0, %v3055_v0 }
  0x3b   : > { %2279 = vmatmul.mubr.msk.f32.gmra.mrb[6].mxu1 %vm342_vm0, %v3065_v4  ;;  %2586 = vmatprep.subr.bf16.mxu0 %v2585_v1 }
  0x3c   : > { %2524 = vmatpush3.bf16.msra.mxu1 %v2521_v63  ;;  %2391 = vmatmul.mubr.msk.f32.gmra.mrb[6].mxu0 %vm342_vm0, %v3075_v8 }
  0x3d   : > { %2588 = vmatpush3.bf16.msra.mxu0 %v2585_v1  ;;  %2297 = vmatprep.mubr.msk.f32.mxu1 %vm342_vm0, %v670_v10 }
  0x3e   : > { %2526 = vmatprep.subr.bf16.mxu1 %v2525_v11  ;;  %2409 = vmatprep.mubr.msk.f32.mxu0 %vm342_vm0, %v2995_v42 }
  0x3f   : > { %2298 = vmatmul.mubr.msk.f32.vlgmr.msra.gmra.mrb[0].mxu1 %vm342_vm0, %v2972_v34  ;;  %2590 = vmatprep.subr.bf16.mxu0 %v2589_v12  ;;  %v2537_v34 = vpack.c.bf16 %v1987_v30, %v1986_v29 }
  0x40   : > { %2528 = vmatpush3.bf16.msra.mxu1 %v2525_v11  ;;  %2410 = vmatmul.mubr.msk.f32.vlgmr.msra.gmra.mrb[0].mxu0 %vm342_vm0, %v3009_v48 }
  0x41   : > { %2592 = vmatpush3.bf16.msra.mxu0 %v2589_v12  ;;  %2300 = vmatprep.mubr.msk.f32.mxu1 %vm342_vm0, %v2991_v41 }
  0x42   : > { %2530 = vmatprep.subr.bf16.mxu1 %v2529_v19  ;;  %2412 = vmatprep.mubr.msk.f32.mxu0 %vm342_vm0, %v3023_v52 }
  0x43   : > { %2301 = vmatmul.mubr.msk.f32.gmra.mrb[2].mxu1 %vm342_vm0, %v2999_v44  ;;  %2594 = vmatprep.subr.bf16.mxu0 %v2593_v20 }
  0x44   : > { %2532 = vmatpush3.bf16.msra.mxu1 %v2529_v19  ;;  %2413 = vmatmul.mubr.msk.f32.gmra.mrb[2].mxu0 %vm342_vm0, %v3037_v58 }
  0x45   : > { %2596 = vmatpush3.bf16.msra.mxu0 %v2593_v20  ;;  %2303 = vmatprep.mubr.msk.f32.mxu1 %vm342_vm0, %v3019_v51 }
  0x46   : > { %2534 = vmatprep.subr.bf16.mxu1 %v2533_v27  ;;  %2415 = vmatprep.mubr.msk.f32.mxu0 %vm342_vm0, %v3051_v62 }
  0x47   : > { %2304 = vmatmul.mubr.msk.f32.gmra.mrb[4].mxu1 %vm342_vm0, %v3027_v54  ;;  %2598 = vmatprep.subr.bf16.mxu0 %v2597_v28 }
  0x48   : > { %2536 = vmatpush3.bf16.msra.mxu1 %v2533_v27  ;;  %2416 = vmatmul.mubr.msk.f32.gmra.mrb[4].mxu0 %vm342_vm0, %v3065_v4 }
  0x49   : > { %2600 = vmatpush3.bf16.msra.mxu0 %v2597_v28  ;;  %2306 = vmatprep.mubr.msk.f32.mxu1 %vm342_vm0, %v3047_v61 }
  0x4a   : > { %2538 = vmatprep.subr.bf16.mxu1 %v2537_v34  ;;  %2418 = vmatprep.mubr.msk.f32.mxu0 %vm342_vm0, %v1293_v35 }
  0x4b   : > { %2307 = vmatmul.mubr.msk.f32.gmra.mrb[6].mxu1 %vm342_vm0, %v3055_v0  ;;  %2602 = vmatprep.subr.bf16.mxu0 %v2601_v36 }
  0x4c   : > { %2540 = vmatpush3.bf16.msra.mxu1 %v2537_v34  ;;  %2419 = vmatmul.mubr.msk.f32.gmra.mrb[6].mxu0 %vm342_vm0, %v1294_v40 }
  0x4d   : > { %2604 = vmatpush3.bf16.msra.mxu0 %v2601_v36  ;;  %2325 = vmatprep.mubr.msk.f32.mxu1 %vm342_vm0, %v2982_v38  ;;  %v2066_v38 = vld [vmem:[%s3275_s3 + $0x230] sm:$0xff] }
  0x4e   : > { %2437 = vmatprep.mubr.msk.f32.mxu0 %vm342_vm0, %v2895_v7  ;;  %2606 = vmatprep.subr.bf16.mxu0 %v2605_v43  ;;  %v2613_v7 = vpack.c.bf16 %v2065_v50, %v2064_v49 }
  0x4f   : > { %2326 = vmatmul.mubr.msk.f32.vlgmr.msra.gmra.mrb[0].mxu1 %vm342_vm0, %v2995_v42  ;;  %2621 = vmatprep.subr.bf16.mxu1 %v2605_v43 }
  0x50   : > { %2438 = vmatmul.mubr.msk.f32.vlgmr.msra.gmra.mrb[0].mxu0 %vm342_vm0, %v2900_v9  ;;  %2625 = vmatpush3.bf16.msra.mxu1 %v2605_v43  ;;  %v2067_v9 = vld [vmem:[%s3275_s3 + $0x238] sm:$0xff] }
  0x51   : > { %2608 = vmatpush3.bf16.msra.mxu0 %v2605_v43  ;;  %2328 = vmatprep.mubr.msk.f32.mxu1 %vm342_vm0, %v3009_v48 }
  0x52   : > { %2440 = vmatprep.mubr.msk.f32.mxu0 %vm342_vm0, %v2918_v15  ;;  %2610 = vmatprep.subr.bf16.mxu0 %v2609_v47  ;;  %v2617_v15 = vpack.c.bf16 %v2067_v9, %v2066_v38 }
  0x53   : > { %2329 = vmatmul.mubr.msk.f32.gmra.mrb[2].mxu1 %vm342_vm0, %v3023_v52  ;;  %2622 = vmatprep.subr.bf16.mxu1 %v2609_v47 }
  0x54   : > { %2441 = vmatmul.mubr.msk.f32.gmra.mrb[2].mxu0 %vm342_vm0, %v2924_v17  ;;  %2626 = vmatpush3.bf16.msra.mxu1 %v2609_v47  ;;  %v1448_v17 = vld [vmem:[#allocation2 + $0x91] sm:$0xff] }
  0x55   : > { %2612 = vmatpush3.bf16.msra.mxu0 %v2609_v47  ;;  %2331 = vmatprep.mubr.msk.f32.mxu1 %vm342_vm0, %v3037_v58 }
  0x56   : > { %2443 = vmatprep.mubr.msk.f32.mxu0 %vm342_vm0, %v2942_v23  ;;  %2614 = vmatprep.subr.bf16.mxu0 %v2613_v7  ;;  %v1602_v23 = vld [vmem:[#allocation2 + $0x92] sm:$0xff] }
  0x57   : > { %2332 = vmatmul.mubr.msk.f32.gmra.mrb[4].mxu1 %vm342_vm0, %v3051_v62  ;;  %2623 = vmatprep.subr.bf16.mxu1 %v2613_v7 }
  0x58   : > { %2444 = vmatmul.mubr.msk.f32.gmra.mrb[4].mxu0 %vm342_vm0, %v2948_v25  ;;  %2627 = vmatpush3.bf16.msra.mxu1 %v2613_v7 }
  0x59   : > { %2616 = vmatpush3.bf16.msra.mxu0 %v2613_v7  ;;  %2334 = vmatprep.mubr.msk.f32.mxu1 %vm342_vm0, %v3065_v4 }
  0x5a   : > { %2446 = vmatprep.mubr.msk.f32.mxu0 %vm342_vm0, %v2966_v31  ;;  %2618 = vmatprep.subr.bf16.mxu0 %v2617_v15 }
  0x5b   : > { %2335 = vmatmul.mubr.msk.f32.gmra.mrb[6].mxu1 %vm342_vm0, %v1293_v35  ;;  %2624 = vmatprep.subr.bf16.mxu1 %v2617_v15 }
  0x5c   : > { %2447 = vmatmul.mubr.msk.f32.gmra.mrb[6].mxu0 %vm342_vm0, %v1448_v17  ;;  %2628 = vmatpush3.bf16.msra.mxu1 %v2617_v15 }
  0x5d   : > { %2620 = vmatpush3.bf16.msra.mxu0 %v2617_v15  ;;  %2471 = vmatprep.mubr.msk.f32.mxu1 %vm342_vm0, %v3047_v61 }
  0x5e   : > { %2465 = vmatprep.mubr.msk.f32.mxu0 %vm342_vm0, %v2991_v41 }
  0x5f   : > { %2472 = vmatmul.mubr.msk.f32.vlgmr.msra.gmra.mrb[8].mxu1 %vm342_vm0, %v3055_v0 }
  0x60   : > { %2466 = vmatmul.mubr.msk.f32.vlgmr.msra.gmra.mrb[0].mxu0 %vm342_vm0, %v2999_v44  ;;  %2474 = vmatprep.mubr.msk.f32.mxu1 %vm342_vm0, %v3075_v8 }
  0x61   : > { %2468 = vmatprep.mubr.msk.f32.mxu0 %vm342_vm0, %v3019_v51 }
  0x63   : > { %2475 = vmatmul.mubr.msk.f32.gmra.mrb[10].mxu1 %vm342_vm0, %v1602_v23 }
  0x64   : > { %2469 = vmatmul.mubr.msk.f32.gmra.mrb[2].mxu0 %vm342_vm0, %v3027_v54  ;;  %v2076_v54 = vld [vmem:[%s3276_s4] ss:$0 sm:$0xff] }
 0x122   : > { %v2327_v25 = vpop.f32.mrb[0].mxu1 }
 0x123   : > { %v931_v31 = vpop.f32.mrb[1].mxu1 }
 0x126   : > { %v2330_v41 = vpop.f32.mrb[2].mxu1 }
 0x127   : > { %v941_v42 = vpop.f32.mrb[3].mxu1 }
 0x12a   : > { %v2333_v48 = vpop.f32.mrb[4].mxu1 }
 0x12b   : > { %v951_v52 = vpop.f32.mrb[5].mxu1  ;;  %v2445_v44 = vpop.f32.mrb[4].mxu0 }
 0x12c   : > { %v2633_v53 = vadd.f32 %v2445_v44, %v2333_v48  ;;  %v1568_v55 = vpop.f32.mrb[5].mxu0 }
 0x12d   : > { %v2635_v56 = vadd.f32 %v1568_v55, %v951_v52 }
 0x12e   : > { %v2336_v57 = vpop.f32.mrb[6].mxu1 }
 0x12f   : > { %v961_v58 = vpop.f32.mrb[7].mxu1  ;;  %v2448_v59 = vpop.f32.mrb[6].mxu0 }
 0x130   : > { %v2637_v51 = vadd.f32 %v2448_v59, %v2336_v57  ;;  %v1578_v60 = vpop.f32.mrb[7].mxu0 }
 0x131   : > { %v2639_v61 = vadd.f32 %v1578_v60, %v961_v58 }
 0x132   : > { %v2473_v62 = vpop.f32.mrb[8].mxu1 }
 0x133   : > { %v2634_v63 = vadd.f32 %v2633_v53, %v2473_v62  ;;  %v2467_v0 = vpop.f32.mrb[0].mxu0  ;;  %v1722_v1 = vpop.f32.mrb[9].mxu1 }
 0x134   : > { %v2629_v2 = vadd.f32 %v2467_v0, %v2327_v25  ;;  %v2636_v3 = vadd.f32 %v2635_v56, %v1722_v1  ;;  %v1702_v4 = vpop.f32.mrb[1].mxu0 }
 0x135   : > { %v1761_v5 = vadd.f32 %v2634_v63, %v2076_v54  ;;  %v2630_v6 = vadd.f32 %v1702_v4, %v931_v31 }
 0x136   : > { %v1757_v8 = vadd.f32 %v2629_v2, %v2076_v54  ;;  %v1760_v10 = vadd.f32 %v2636_v3, %v2076_v54  ;;  %v2476_v11 = vpop.f32.mrb[10].mxu1 }
 0x137   : > { %1769 = vst.msk [vmem:[%s3225_s19 + $0x28] sm:$0xff] %vm342_vm0, %v1761_v5  ;;  %v1756_v12 = vadd.f32 %v2630_v6, %v2076_v54  ;;  %v2638_v13 = vadd.f32 %v2637_v51, %v2476_v11  ;;  %v2470_v14 = vpop.f32.mrb[2].mxu0  ;;  %v1732_v16 = vpop.f32.mrb[11].mxu1  ;;  %v1799_v7 = vmul.f32 %v1761_v5, %v1761_v5  ;;  %v1781_v23 = vsel %vm342_vm0, %v1761_v5, 0.0 }
 0x138   : > { %1765 = vst.msk [vmem:[%s3225_s19 + $0x8] sm:$0xff] %vm342_vm0, %v1757_v8  ;;  %v1773_v18 = vsel %vm342_vm0, %v1757_v8, 0.0  ;;  %v1795_v19 = vmul.f32 %v1757_v8, %v1757_v8  ;;  %1768 = vst.msk [vmem:[%s3225_s19 + $0x20] sm:$0xff] %vm342_vm0, %v1760_v10  ;;  %v1712_v20 = vpop.f32.mrb[3].mxu0  ;;  %v2631_v28 = vadd.f32 %v2470_v14, %v2330_v41  ;;  %v2640_v30 = vadd.f32 %v2639_v61, %v1732_v16 }
 0x139   : > { %1764 = vst.msk [vmem:[%s3225_s19] sm:$0xff] %vm342_vm0, %v1756_v12  ;;  %v1772_v21 = vsel %vm342_vm0, %v1756_v12, 0.0  ;;  %v1794_v22 = vmul.f32 %v1756_v12, %v1756_v12  ;;  %v1763_v24 = vadd.f32 %v2638_v13, %v2076_v54  ;;  %v2632_v34 = vadd.f32 %v1712_v20, %v941_v42 }
 0x13a   : > { %v1803_v26 = vsel %vm342_vm0, %v1795_v19, 0.0  ;;  %v1774_v27 = vadd.f32 %v1773_v18, %v1772_v21  ;;  %v1759_v33 = vadd.f32 %v2631_v28, %v2076_v54  ;;  %v1762_v35 = vadd.f32 %v2640_v30, %v2076_v54 }
 0x13b   : > { %v1802_v29 = vsel %vm342_vm0, %v1794_v22, 0.0  ;;  %1771 = vst.msk [vmem:[%s3225_s19 + $0x38] sm:$0xff] %vm342_vm0, %v1763_v24  ;;  %v1758_v36 = vadd.f32 %v2632_v34, %v2076_v54  ;;  %v1798_v45 = vmul.f32 %v1760_v10, %v1760_v10  ;;  %v1779_v38 = vsel %vm342_vm0, %v1760_v10, 0.0 }
 0x13c   : > { %v1804_v32 = vadd.f32 %v1803_v26, %v1802_v29  ;;  %1767 = vst.msk [vmem:[%s3225_s19 + $0x18] sm:$0xff] %vm342_vm0, %v1759_v33  ;;  %1770 = vst.msk [vmem:[%s3225_s19 + $0x30] sm:$0xff] %vm342_vm0, %v1762_v35  ;;  %v1797_v37 = vmul.f32 %v1759_v33, %v1759_v33  ;;  %v1777_v46 = vsel %vm342_vm0, %v1759_v33, 0.0  ;;  %v1800_v31 = vmul.f32 %v1762_v35, %v1762_v35 }
 0x13d   : > { %1766 = vst.msk [vmem:[%s3225_s19 + $0x10] sm:$0xff] %vm342_vm0, %v1758_v36  ;;  %v1775_v39 = vsel %vm342_vm0, %v1758_v36, 0.0  ;;  %v1796_v40 = vmul.f32 %v1758_v36, %v1758_v36  ;;  %v1809_v25 = vsel %vm342_vm0, %v1798_v45, 0.0  ;;  %v1811_v48 = vsel %vm342_vm0, %v1799_v7, 0.0 }
 0x13e   : > { %v1776_v43 = vadd.f32 %v1775_v39, %v1774_v27  ;;  %v1807_v9 = vsel %vm342_vm0, %v1797_v37, 0.0  ;;  %v1801_v52 = vmul.f32 %v1763_v24, %v1763_v24  ;;  %v1783_v44 = vsel %vm342_vm0, %v1762_v35, 0.0 }
 0x13f   : > { %v1805_v47 = vsel %vm342_vm0, %v1796_v40, 0.0  ;;  %v1785_v56 = vsel %vm342_vm0, %v1763_v24, 0.0  ;;  %v1813_v57 = vsel %vm342_vm0, %v1800_v31, 0.0 }
 0x140   : > { %v1778_v49 = vadd.f32 %v1777_v46, %v1776_v43  ;;  %v1806_v50 = vadd.f32 %v1805_v47, %v1804_v32  ;;  %v1815_v51 = vsel %vm342_vm0, %v1801_v52, 0.0 }
 0x142   : > { %v1780_v15 = vadd.f32 %v1779_v38, %v1778_v49  ;;  %v1808_v17 = vadd.f32 %v1807_v9, %v1806_v50 }
 0x144   : > { %v1782_v41 = vadd.f32 %v1781_v23, %v1780_v15  ;;  %v1810_v42 = vadd.f32 %v1809_v25, %v1808_v17 }
 0x146   : > { %v1784_v53 = vadd.f32 %v1783_v44, %v1782_v41  ;;  %v1812_v55 = vadd.f32 %v1811_v48, %v1810_v42 }
 0x148   : > { %v1786_v58 = vadd.f32 %v1785_v56, %v1784_v53  ;;  %v1814_v59 = vadd.f32 %v1813_v57, %v1812_v55 }
 0x14a   : > { %v1787_v60 = vrot.slane %v1786_v58, 4  ;;  %v1816_v61 = vadd.f32 %v1815_v51, %v1814_v59 }
 0x14c   : > { %v1788_v62 = vadd.f32 %v1787_v60, %v1786_v58  ;;  %v1817_v54 = vrot.slane %v1816_v61, 4 }
 0x14e   : > { %v1789_v63 = vrot.slane %v1788_v62, 2  ;;  %v1818_v0 = vadd.f32 %v1817_v54, %v1816_v61 }
 0x150   : > { %v1790_v1 = vadd.f32 %v1789_v63, %v1788_v62  ;;  %v1819_v2 = vrot.slane %v1818_v0, 2 }
 0x152   : > { %v1791_v3 = vrot.slane %v1790_v1, 1  ;;  %v1820_v4 = vadd.f32 %v1819_v2, %v1818_v0 }
 0x154   : > { %v1792_v5 = vadd.f32 %v1791_v3, %v1790_v1  ;;  %v1821_v6 = vrot.slane %v1820_v4, 1 }
 0x156   : > { %1793 = vst.msk [vmem:[%s292_s21] sm:$0x1] %vm349_vm2, %v1792_v5  ;;  %v1822_v8 = vadd.f32 %v1821_v6, %v1820_v4 }
 0x158   : > { %1823 = vst.msk [vmem:[%s295_s26] sm:$0x1] %vm349_vm2, %v1822_v8 }
 0x159 PF: > { %s18_s24 = sadd.s32 1, %s2708_s24  }
 0x15a   : > { %p15_p4 = scmp.ge.s32.totalorder %s18_s24, 4  }
 0x15c   :  { %17 = sbr.rel (!%p15_p4) target bundleno = 1 (0x1), region = 105 }

</bundles_post_ra>
